<compile_context>
chip_gen: v7x
topology: tpu7x:2x2x1
jax: 0.10.0
libtpu: 0.0.40
codegen_flags: <defaults>
</compile_context>

<pallas_src>
import jax
import jax.numpy as jnp
from jax import lax
from jax.experimental import pallas as pl
from jax.experimental.pallas import tpu as pltpu

# ---- model config (small, consistent with the module's __init__) ----
FEATURE_SIZE = 64        # vocabulary size of the embedding tables
FIELD_SIZE = 8           # number of fields per example
EMBED_SIZE = 16          # embedding dimension
DEEP_DIMS = (32, 16)     # deep_layers_dim
BATCH = 256


def deepfm_kernel(feat_ref, val_ref, rep_ref, g_ref, b1_ref, w2_ref, b2_ref,
                  red_ref, bp_ref, out_ref):
    """One batch tile (batch on lanes): gather + FM + MLP + predict, lane-dense out."""
    feat_t = feat_ref[...]     # [F, TB]  features[b,f] + f*V (exact small ints as f32)
    val_t = val_ref[...]       # [F, TB]

    # Replicate each field's id/value V times along the sublane axis (tiny MXU matmuls).
    rep_t = rep_ref[...]                                                   # [F*V, F]
    rep_idx = jnp.dot(rep_t, feat_t, preferred_element_type=jnp.float32)   # [F*V, TB]
    rep_val = jnp.dot(rep_t, val_t, preferred_element_type=jnp.float32)    # [F*V, TB]

    # Scaled one-hot: onehot[f*V+v, b] = feature_values[b,f] iff features[b,f] == v.
    row = lax.broadcasted_iota(jnp.int32, rep_idx.shape, 0).astype(jnp.float32)
    onehot = jnp.where(rep_idx == row, rep_val, 0.0)                        # [F*V, TB]

    # Single fused MXU pass: gather+scale+flatten, per-dim field sums,
    # deep layer-1 pre-activation, and (wp[0,0]-scaled) first-order term.
    fused = jnp.dot(g_ref[...], onehot, preferred_element_type=jnp.float32)  # [FE+E+H1+1, TB]

    n_g = g_ref.shape[0]          # FE + E + H1 + 1
    n_h1 = b1_ref.shape[0]        # H1
    i_first = n_g - 1
    i_h = i_first - n_h1

    sq = fused[:i_h, :]           # [FE+E, TB]  -> [deep_in ; field sums]
    first = fused[i_first:, :]    # [1, TB]     -> wp[0,0] * first_order (pre-scaled)

    # Deep MLP (dropout = identity at inference; batch_norm disabled).
    # TODO(synk): dropout_fm / dropout_deep are identity in eval mode; not modeled.
    h = jnp.maximum(fused[i_h:i_first, :] + b1_ref[...], 0.0)              # [H1, TB]
    h = jnp.maximum(jnp.dot(w2_ref[...], h, preferred_element_type=jnp.float32)
                    + b2_ref[...], 0.0)                                    # [H2, TB]

    # FM second order + deep head as ONE small MXU matmul against a pre-scaled
    # reducer row (-0.5*wp1 for deep_in^2, +0.5*wp1 for field-sum^2, wp[0,2:] for h).
    pre = jnp.concatenate([sq * sq, h], axis=0)                            # [FE+E+H2, TB]
    reduced = jnp.dot(red_ref[...], pre, preferred_element_type=jnp.float32)  # [1, TB]

    # Lane-dense store: batch already lives on the lane axis.
    out_ref[...] = reduced + first + bp_ref[0]


def _pick_tile_b(batch, cap=512):
    """Largest 128-multiple batch tile; keep >=2 grid steps on 2-TensorCore chips."""
    kind = jax.devices()[0].device_kind.lower()
    multi_tc = any(v in kind for v in ("v7", "7x", "v5p", "v4", "v3"))
    min_grid = 2 if multi_tc else 1
    tile = 128
    while (tile * 2 <= cap and batch >= tile * 2
           and (batch + tile * 2 - 1) // (tile * 2) >= min_grid):
        tile *= 2
    return tile


def deepfm_forward(features, feature_values, params, *, tile_b=None):
    """Build fused constant matrices, tile the batch, call the kernel. Returns [B]."""
    (emb_table, bias_table, w1, b1, w2, b2, wp, bp) = params
    B, F = features.shape
    V, E = emb_table.shape
    assert F * V < (1 << 24), "f32 one-hot index compare needs exact integers"

    if tile_b is None:
        tile_b = _pick_tile_b(B)

    f32 = jnp.float32
    eye_f = jnp.eye(F, dtype=f32)

    # ---- constant gather / fold matrices (built once in the wrapper, tiny) ----
    rep_t = jnp.kron(eye_f, jnp.ones((V, 1), f32))             # [F*V, F] sublane-repeat
    emb_blk = jnp.kron(eye_f, emb_table.astype(f32))           # [F*V, F*E] block-diag table
    p_mat = jnp.tile(jnp.eye(E, dtype=f32), (F, 1))            # [F*E, E] stacked identity
    bias_blk = jnp.tile(bias_table.astype(f32), (F, 1))        # [F*V, 1]
    wpf = wp.astype(f32)

    g_mat = jnp.concatenate([
        emb_blk,                                # rows 0:FE        -> deep input
        emb_blk @ p_mat,                        # rows FE:FE+E     -> per-dim field sums
        emb_blk @ w1.astype(f32),               # rows ...:...+H1  -> layer-1 pre-activation
        bias_blk * wpf[0, 0],                   # last row         -> wp0 * first order
    ], axis=1).T                                                 # [FE+E+H1+1, F*V]

    reducer = jnp.concatenate([
        jnp.full((F * E, 1), -0.5 * wpf[0, 1], f32),            # -0.5*wp1 * sum fe^2
        jnp.full((E, 1), 0.5 * wpf[0, 1], f32),                 # +0.5*wp1 * sum sums^2
        wpf[:, 2:].T,                                           # deep head weights
    ], axis=0).T                                                 # [1, FE+E+H2]

    b1c = b1.astype(f32).reshape(-1, 1)                          # [H1, 1]
    b2c = b2.astype(f32).reshape(-1, 1)                          # [H2, 1]
    w2t = w2.astype(f32).T                                       # [H2, H1]
    bpf = bp.astype(f32).reshape(-1)                             # [1]  (SMEM scalar)

    # ---- pad batch, pre-offset ids, go feature-major (batch on the lane axis) ----
    b_pad = ((B + tile_b - 1) // tile_b) * tile_b
    pad = b_pad - B
    feat_off = features + (jnp.arange(F, dtype=features.dtype) * V)[None, :]
    feat_t = jnp.pad(feat_off, ((0, pad), (0, 0))).astype(f32).T        # [F, b_pad]
    val_t = jnp.pad(feature_values.astype(f32), ((0, pad), (0, 0))).T   # [F, b_pad]

    batch_map = lambda i: (0, i)
    const_map = lambda i: (0, 0)
    resident = lambda a: pl.BlockSpec(a.shape, const_map)  # loaded once, stays in VMEM

    out = pl.pallas_call(
        deepfm_kernel,
        out_shape=jax.ShapeDtypeStruct((1, b_pad), f32),
        grid=(b_pad // tile_b,),
        in_specs=[
            pl.BlockSpec((F, tile_b), batch_map),                # feature ids (pre-offset)
            pl.BlockSpec((F, tile_b), batch_map),                # feature values
            resident(rep_t),
            resident(g_mat),
            resident(b1c),
            resident(w2t),
            resident(b2c),
            resident(reducer),
            pl.BlockSpec(memory_space=pltpu.MemorySpace.SMEM),   # predict-layer bias
        ],
        out_specs=pl.BlockSpec((1, tile_b), batch_map),          # lane-dense output row
        compiler_params=pltpu.CompilerParams(
            dimension_semantics=("parallel",)),
    )(feat_t, val_t, rep_t, g_mat, b1c, w2t, b2c, reducer, bpf)
    return out[0, :B]


def deepfm_reference(features, feature_values, params):
    """Pure-JAX reference mirroring the PyTorch forward."""
    (emb_table, bias_table, w1, b1, w2, b2, wp, bp) = params
    fe = emb_table[features] * feature_values[:, :, None]
    first = jnp.sum(bias_table[features][..., 0] * feature_values, axis=1, keepdims=True)
    sum_sq = jnp.sum(fe, axis=1) ** 2
    sq_sum = jnp.sum(fe ** 2, axis=1)
    second = 0.5 * jnp.sum(sum_sq - sq_sum, axis=1, keepdims=True)
    h = jnp.maximum(fe.reshape(fe.shape[0], -1) @ w1 + b1, 0.0)
    h = jnp.maximum(h @ w2 + b2, 0.0)
    concat = jnp.concatenate([first, second, h], axis=1)
    return (concat @ wp.T + bp).reshape(-1)


def make_params():
    """Deterministic parameter init (mirrors reset_parameters shapes)."""
    keys = jax.random.split(jax.random.PRNGKey(0), 8)
    in_dim = FIELD_SIZE * EMBED_SIZE
    h1, h2 = DEEP_DIMS

    emb_table = 0.01 * jax.random.normal(keys[0], (FEATURE_SIZE, EMBED_SIZE), jnp.float32)
    bias_table = jax.random.uniform(keys[1], (FEATURE_SIZE, 1), dtype=jnp.float32)

    def xavier(key, fan_in, fan_out, shape):
        return jax.random.normal(key, shape, jnp.float32) * jnp.sqrt(2.0 / (fan_in + fan_out))

    w1 = xavier(keys[2], in_dim, h1, (in_dim, h1))
    b1 = jnp.zeros((h1,), jnp.float32)
    w2 = xavier(keys[3], h1, h2, (h1, h2))
    b2 = jnp.zeros((h2,), jnp.float32)
    # predict layer: Linear(h2 + 2, 1), weight shape [1, h2+2]
    wp = xavier(keys[4], h2 + 2, 1, (1, h2 + 2))
    bp = jnp.zeros((1,), jnp.float32)
    return (emb_table, bias_table, w1, b1, w2, b2, wp, bp)


if __name__ == "__main__":
    params = make_params()

    key = jax.random.PRNGKey(0)
    kf, kv = jax.random.split(key)
    features = jax.random.randint(kf, (BATCH, FIELD_SIZE), 0, FEATURE_SIZE, dtype=jnp.int32)
    feature_values = jax.random.uniform(kv, (BATCH, FIELD_SIZE), dtype=jnp.float32)

    fwd = jax.jit(deepfm_forward)
    out = jax.block_until_ready(fwd(features, feature_values, params))

    ref = deepfm_reference(features, feature_values, params)
    assert out.shape == (BATCH,)
    assert jnp.allclose(out, ref, atol=1e-4, rtol=1e-4), (out, ref)

    print("KERNEL_OK")
</pallas_src>

<mosaic_0001>
module attributes {stable_mosaic.version = 11 : i64} {
  func.func @deepfm_kernel(%arg0: i32, %arg1: memref<8x256xf32, #tpu.memory_space<vmem>>, %arg2: memref<8x256xf32, #tpu.memory_space<vmem>>, %arg3: memref<512x8xf32, #tpu.memory_space<vmem>>, %arg4: memref<177x512xf32, #tpu.memory_space<vmem>>, %arg5: memref<32x1xf32, #tpu.memory_space<vmem>>, %arg6: memref<16x32xf32, #tpu.memory_space<vmem>>, %arg7: memref<16x1xf32, #tpu.memory_space<vmem>>, %arg8: memref<1x160xf32, #tpu.memory_space<vmem>>, %arg9: memref<1xf32, #tpu.memory_space<smem>>, %arg10: memref<1x256xf32, #tpu.memory_space<vmem>>) attributes {dimension_semantics = [#tpu.dimension_semantics<parallel>], iteration_bounds = array<i64: 1>, scalar_prefetch = 0 : i64, scratch_operands = 0 : i64, tpu.core_type = #tpu.core_type<tc>, window_params = [{transform_indices = @transform_0, window_bounds = array<i64: 8, 256>}, {transform_indices = @transform_1, window_bounds = array<i64: 8, 256>}, {pipeline_mode = #tpu.pipeline_mode<synchronous>, transform_indices = @transform_2, window_bounds = array<i64: 512, 8>}, {pipeline_mode = #tpu.pipeline_mode<synchronous>, transform_indices = @transform_3, window_bounds = array<i64: 177, 512>}, {pipeline_mode = #tpu.pipeline_mode<synchronous>, transform_indices = @transform_4, window_bounds = array<i64: 32, 1>}, {pipeline_mode = #tpu.pipeline_mode<synchronous>, transform_indices = @transform_5, window_bounds = array<i64: 16, 32>}, {pipeline_mode = #tpu.pipeline_mode<synchronous>, transform_indices = @transform_6, window_bounds = array<i64: 16, 1>}, {pipeline_mode = #tpu.pipeline_mode<synchronous>, transform_indices = @transform_7, window_bounds = array<i64: 1, 160>}, {transform_indices = @transform_8, window_bounds = array<i64: 1>}, {transform_indices = @transform_9, window_bounds = array<i64: 1, 256>}]} {
    %c0 = arith.constant 0 : index
    %c0_0 = arith.constant 0 : index
    %0 = vector.load %arg1[%c0, %c0_0] : memref<8x256xf32, #tpu.memory_space<vmem>>, vector<8x256xf32>
    %c0_1 = arith.constant 0 : index
    %c0_2 = arith.constant 0 : index
    %1 = vector.load %arg2[%c0_1, %c0_2] : memref<8x256xf32, #tpu.memory_space<vmem>>, vector<8x256xf32>
    %c0_3 = arith.constant 0 : index
    %c0_4 = arith.constant 0 : index
    %2 = vector.load %arg3[%c0_3, %c0_4] : memref<512x8xf32, #tpu.memory_space<vmem>>, vector<512x8xf32>
    %cst = arith.constant dense<0.000000e+00> : vector<512x256xf32>
    %3 = tpu.matmul %2, %0, %cst {dimension_numbers = #tpu.dot_dimension_numbers<[1], [0], [0], [1], [0, 0, 1, 1], [], []>} : vector<512x8xf32>, vector<8x256xf32>, vector<512x256xf32> -> vector<512x256xf32>
    %cst_5 = arith.constant dense<0.000000e+00> : vector<512x256xf32>
    %4 = tpu.matmul %2, %1, %cst_5 {dimension_numbers = #tpu.dot_dimension_numbers<[1], [0], [0], [1], [0, 0, 1, 1], [], []>} : vector<512x8xf32>, vector<8x256xf32>, vector<512x256xf32> -> vector<512x256xf32>
    %5 = tpu.iota {dimensions = array<i32: 0>} : vector<512x256xi32>
    %6 = arith.sitofp %5 : vector<512x256xi32> to vector<512x256xf32>
    %7 = arith.cmpf oeq, %3, %6 : vector<512x256xf32>
    %cst_6 = arith.constant 0.000000e+00 : f32
    %8 = vector.broadcast %cst_6 : f32 to vector<512x256xf32>
    %9 = arith.select %7, %4, %8 : vector<512x256xi1>, vector<512x256xf32>
    %c0_7 = arith.constant 0 : index
    %c0_8 = arith.constant 0 : index
    %10 = vector.load %arg4[%c0_7, %c0_8] : memref<177x512xf32, #tpu.memory_space<vmem>>, vector<177x512xf32>
    %cst_9 = arith.constant dense<0.000000e+00> : vector<177x256xf32>
    %11 = tpu.matmul %10, %9, %cst_9 {dimension_numbers = #tpu.dot_dimension_numbers<[1], [0], [0], [1], [0, 0, 1, 1], [], []>} : vector<177x512xf32>, vector<512x256xf32>, vector<177x256xf32> -> vector<177x256xf32>
    %12 = vector.extract_strided_slice %11 {offsets = [0, 0], sizes = [144, 256], strides = [1, 1]} : vector<177x256xf32> to vector<144x256xf32>
    %13 = vector.extract_strided_slice %11 {offsets = [176, 0], sizes = [1, 256], strides = [1, 1]} : vector<177x256xf32> to vector<1x256xf32>
    %14 = vector.extract_strided_slice %11 {offsets = [144, 0], sizes = [32, 256], strides = [1, 1]} : vector<177x256xf32> to vector<32x256xf32>
    %c0_10 = arith.constant 0 : index
    %c0_11 = arith.constant 0 : index
    %15 = vector.load %arg5[%c0_10, %c0_11] : memref<32x1xf32, #tpu.memory_space<vmem>>, vector<32x1xf32>
    %16 = vector.broadcast %15 : vector<32x1xf32> to vector<32x256xf32>
    %17 = arith.addf %14, %16 : vector<32x256xf32>
    %cst_12 = arith.constant 0.000000e+00 : f32
    %18 = vector.broadcast %cst_12 : f32 to vector<32x256xf32>
    %19 = arith.maximumf %17, %18 : vector<32x256xf32>
    %c0_13 = arith.constant 0 : index
    %c0_14 = arith.constant 0 : index
    %20 = vector.load %arg6[%c0_13, %c0_14] : memref<16x32xf32, #tpu.memory_space<vmem>>, vector<16x32xf32>
    %cst_15 = arith.constant dense<0.000000e+00> : vector<16x256xf32>
    %21 = tpu.matmul %20, %19, %cst_15 {dimension_numbers = #tpu.dot_dimension_numbers<[1], [0], [0], [1], [0, 0, 1, 1], [], []>} : vector<16x32xf32>, vector<32x256xf32>, vector<16x256xf32> -> vector<16x256xf32>
    %c0_16 = arith.constant 0 : index
    %c0_17 = arith.constant 0 : index
    %22 = vector.load %arg7[%c0_16, %c0_17] : memref<16x1xf32, #tpu.memory_space<vmem>>, vector<16x1xf32>
    %23 = vector.broadcast %22 : vector<16x1xf32> to vector<16x256xf32>
    %24 = arith.addf %21, %23 : vector<16x256xf32>
    %cst_18 = arith.constant 0.000000e+00 : f32
    %25 = vector.broadcast %cst_18 : f32 to vector<16x256xf32>
    %26 = arith.maximumf %24, %25 : vector<16x256xf32>
    %27 = arith.mulf %12, %12 : vector<144x256xf32>
    %28 = tpu.concatenate %27, %26 in 0 : vector<144x256xf32>, vector<16x256xf32> -> vector<160x256xf32>
    %c0_19 = arith.constant 0 : index
    %c0_20 = arith.constant 0 : index
    %29 = vector.load %arg8[%c0_19, %c0_20] : memref<1x160xf32, #tpu.memory_space<vmem>>, vector<1x160xf32>
    %cst_21 = arith.constant dense<0.000000e+00> : vector<1x256xf32>
    %30 = tpu.matmul %29, %28, %cst_21 {dimension_numbers = #tpu.dot_dimension_numbers<[1], [0], [0], [1], [0, 0, 1, 1], [], []>} : vector<1x160xf32>, vector<160x256xf32>, vector<1x256xf32> -> vector<1x256xf32>
    %31 = arith.addf %30, %13 : vector<1x256xf32>
    %c0_22 = arith.constant 0 : index
    %32 = memref.load %arg9[%c0_22] : memref<1xf32, #tpu.memory_space<smem>>
    %33 = vector.broadcast %32 : f32 to vector<1x256xf32>
    %34 = arith.addf %31, %33 : vector<1x256xf32>
    %c0_23 = arith.constant 0 : index
    %c0_24 = arith.constant 0 : index
    %35 = vector.load %arg10[%c0_23, %c0_24] : memref<1x256xf32, #tpu.memory_space<vmem>>, vector<1x256xf32>
    tpu.vector_store %arg10[%c0_23, %c0_24], %34 {strides = array<i32>} : memref<1x256xf32, #tpu.memory_space<vmem>>, vector<1x256xf32>,
    return
  }
  func.func @transform_0(%arg0: i32) -> (i32, i32) {
    %c0_i32 = arith.constant 0 : i32
    %c0_i32_0 = arith.constant 0 : i32
    return %c0_i32, %arg0 : i32, i32
  }
  func.func @transform_1(%arg0: i32) -> (i32, i32) {
    %c0_i32 = arith.constant 0 : i32
    %c0_i32_0 = arith.constant 0 : i32
    return %c0_i32, %arg0 : i32, i32
  }
  func.func @transform_2(%arg0: i32) -> (i32, i32) {
    %c0_i32 = arith.constant 0 : i32
    %c0_i32_0 = arith.constant 0 : i32
    %c0_i32_1 = arith.constant 0 : i32
    return %c0_i32, %c0_i32_0 : i32, i32
  }
  func.func @transform_3(%arg0: i32) -> (i32, i32) {
    %c0_i32 = arith.constant 0 : i32
    %c0_i32_0 = arith.constant 0 : i32
    %c0_i32_1 = arith.constant 0 : i32
    return %c0_i32, %c0_i32_0 : i32, i32
  }
  func.func @transform_4(%arg0: i32) -> (i32, i32) {
    %c0_i32 = arith.constant 0 : i32
    %c0_i32_0 = arith.constant 0 : i32
    %c0_i32_1 = arith.constant 0 : i32
    return %c0_i32, %c0_i32_0 : i32, i32
  }
  func.func @transform_5(%arg0: i32) -> (i32, i32) {
    %c0_i32 = arith.constant 0 : i32
    %c0_i32_0 = arith.constant 0 : i32
    %c0_i32_1 = arith.constant 0 : i32
    return %c0_i32, %c0_i32_0 : i32, i32
  }
  func.func @transform_6(%arg0: i32) -> (i32, i32) {
    %c0_i32 = arith.constant 0 : i32
    %c0_i32_0 = arith.constant 0 : i32
    %c0_i32_1 = arith.constant 0 : i32
    return %c0_i32, %c0_i32_0 : i32, i32
  }
  func.func @transform_7(%arg0: i32) -> (i32, i32) {
    %c0_i32 = arith.constant 0 : i32
    %c0_i32_0 = arith.constant 0 : i32
    %c0_i32_1 = arith.constant 0 : i32
    return %c0_i32, %c0_i32_0 : i32, i32
  }
  func.func @transform_8(%arg0: i32) -> i32 {
    %c0_i32 = arith.constant 0 : i32
    %c0_i32_0 = arith.constant 0 : i32
    return %c0_i32 : i32
  }
  func.func @transform_9(%arg0: i32) -> (i32, i32) {
    %c0_i32 = arith.constant 0 : i32
    %c0_i32_0 = arith.constant 0 : i32
    return %c0_i32, %arg0 : i32, i32
  }
}

</mosaic_0001>

<bundles_post_ra>
// kernel: deepfm_forward.1
= control target key start
LH: loop header
LB: loop body
LE: loop exit
PB: predicated region body
PF: predicated region fallthrough
CT: control target
= control target key end

     0   :  { %vm5217_vm0 = vcmask 64512   ;;  %v5251_v3 = vmov 0.0   ;;  %s5207_s0 = inlined_call_operand.vmem [shape: f32[8,256], index: 0, kind: input, shape index: {}]   ;;  %s5208_s1 = inlined_call_operand.vmem [shape: f32[8,256], index: 1, kind: input, shape index: {}]   ;;  %s5209_s2 = inlined_call_operand.vmem [shape: f32[512,8], index: 2, kind: input, shape index: {}]   ;;  %s5210_s3 = inlined_call_operand.vmem [shape: f32[177,512], index: 3, kind: input, shape index: {}]   ;;  %s5211_s4 = inlined_call_operand.vmem [shape: f32[32,1], index: 4, kind: input, shape index: {}]   ;;  %s5212_s5 = inlined_call_operand.vmem [shape: f32[16,32], index: 5, kind: input, shape index: {}]   ;;  %s5213_s6 = inlined_call_operand.vmem [shape: f32[16,1], index: 6, kind: input, shape index: {}]   ;;  %s5214_s7 = inlined_call_operand.vmem [shape: f32[1,160], index: 7, kind: input, shape index: {}]   ;;  %s5215_s8 = inlined_call_operand.<no memory space> [shape: f32[1], index: 8, kind: input, shape index: {}]   ;;  %s5216_s9 = inlined_call_operand.hbm [shape: f32[1,256], index: 9, kind: output, shape index: {}]  }
   0x1   :  { %v35_v0 = vld [vmem:[%s5207_s0 + $0x8] sm:$0xff]  ;;  %v34_v1 = vld [vmem:[%s5207_s0] sm:$0xff]  ;;  %v3035_v2 = vld [vmem:[%s5209_s2 + $0x150] sm:$0xff]  ;;  %611 = vmatprep.mubr.f32.mxu1 %v5251_v3  ;;  %359 = vmatprep.mubr.f32.mxu0 %v5251_v3 }
   0x2   :  { %2878 = vmatprep.subr.mxu1 %v35_v0  ;;  %295 = vmatprep.subr.mxu0 %v35_v0  ;;  %v3044_v4 = vld [vmem:[%s5209_s2 + $0x158] sm:$0xff]  ;;  %v3052_v5 = vld [vmem:[%s5209_s2 + $0x160] sm:$0xff]  ;;  %v37_v6 = vld [vmem:[%s5208_s1 + $0x8] sm:$0xff] }
   0x3   :  { %2879 = vmatpush1.msra.mxu1 %v34_v1  ;;  %296 = vmatpush1.msra.mxu0 %v34_v1  ;;  %v36_v7 = vld [vmem:[%s5208_s1] sm:$0xff]  ;;  %v3072_v9 = vld [vmem:[%s5209_s2 + $0x8] sm:$0xff] }
   0x4   :  { %2421 = vmatmul.mubr.msk.f32.vlgmr.msra.gmra.mrb[0].mxu1 %vm5217_vm0, %v3035_v2  ;;  %v3064_v8 = vld [vmem:[%s5209_s2] sm:$0xff]  ;;  %744 = vmatprep.subr.mxu1 %v37_v6  ;;  %v3080_v10 = vld [vmem:[%s5209_s2 + $0x168] sm:$0xff] }
   0x5   :  { %617 = vmatprep.mubr.f32.mxu1 %v5251_v3  ;;  %2379 = vmatmul.mubr.msk.f32.vlgmr.msra.gmra.mrb[0].mxu0 %vm5217_vm0, %v3064_v8 }
   0x6   :  { %745 = vmatpush1.msra.mxu1 %v36_v7  ;;  %365 = vmatprep.mubr.f32.mxu0 %v5251_v3 }
   0x8   :  { %2422 = vmatmul.mubr.msk.f32.gmra.mrb[2].mxu1 %vm5217_vm0, %v3044_v4 }
   0x9   :  { %623 = vmatprep.mubr.f32.mxu1 %v5251_v3  ;;  %2380 = vmatmul.mubr.msk.f32.gmra.mrb[2].mxu0 %vm5217_vm0, %v3072_v9 }
   0xc   :  { %2423 = vmatmul.mubr.msk.f32.gmra.mrb[4].mxu1 %vm5217_vm0, %v3052_v5 }
   0xd   :  { %629 = vmatprep.mubr.f32.mxu1 %v5251_v3 }
   0xe   :  { %15 = vsyncpa [#allocation4], 0  ;;  %371 = vmatprep.mubr.f32.mxu0 %v5251_v3  ;;  %v3088_v11 = vld [vmem:[%s5209_s2 + $0x10] sm:$0xff]  ;;  %v3104_v13 = vld [vmem:[%s5209_s2 + $0x18] sm:$0xff] }
   0xf   :  { %v3096_v12 = vld [vmem:[%s5209_s2 + $0x170] sm:$0xff]  ;;  %2381 = vmatmul.mubr.msk.f32.gmra.mrb[4].mxu0 %vm5217_vm0, %v3088_v11  ;;  %v3112_v14 = vld [vmem:[%s5209_s2 + $0x178] sm:$0xff]  ;;  %v3120_v15 = vld [vmem:[%s5209_s2 + $0x20] sm:$0xff] }
  0x10   :  { %2424 = vmatmul.mubr.msk.f32.gmra.mrb[6].mxu1 %vm5217_vm0, %v3080_v10  ;;  %377 = vmatprep.mubr.f32.mxu0 %v5251_v3  ;;  %v3128_v16 = vld [vmem:[%s5209_s2 + $0x180] sm:$0xff]  ;;  %v3136_v17 = vld [vmem:[%s5209_s2 + $0x28] sm:$0xff]  ;;  %v3152_v19 = vld [vmem:[%s5209_s2 + $0x30] sm:$0xff] }
  0x11   :  { %635 = vmatprep.mubr.f32.mxu1 %v5251_v3  ;;  %v3144_v18 = vld [vmem:[%s5209_s2 + $0x188] sm:$0xff]  ;;  %v88_v20 = vld [vmem:[%s5209_s2 + $0x190] sm:$0xff]  ;;  %v3166_v21 = vld [vmem:[%s5209_s2 + $0x38] sm:$0xff] }
  0x12   :  { %v89_v22 = vld [vmem:[%s5209_s2 + $0x198] sm:$0xff]  ;;  %v3179_v23 = vld [vmem:[%s5209_s2 + $0x40] sm:$0xff]  ;;  %v3192_v25 = vld [vmem:[%s5209_s2 + $0x48] sm:$0xff] }
  0x13   :  { %2382 = vmatmul.mubr.msk.f32.gmra.mrb[6].mxu0 %vm5217_vm0, %v3104_v13  ;;  %v90_v24 = vld [vmem:[%s5209_s2 + $0x1a0] sm:$0xff]  ;;  %v91_v26 = vld [vmem:[%s5209_s2 + $0x1a8] sm:$0xff]  ;;  %v3205_v27 = vld [vmem:[%s5209_s2 + $0x50] sm:$0xff] }
  0x14   :  { %2425 = vmatmul.mubr.msk.f32.gmra.mrb[8].mxu1 %vm5217_vm0, %v3096_v12  ;;  %383 = vmatprep.mubr.f32.mxu0 %v5251_v3  ;;  %v92_v28 = vld [vmem:[%s5209_s2 + $0x1b0] sm:$0xff]  ;;  %v3218_v29 = vld [vmem:[%s5209_s2 + $0x58] sm:$0xff]  ;;  %v3231_v31 = vld [vmem:[%s5209_s2 + $0x60] sm:$0xff] }
  0x15   :  { %641 = vmatprep.mubr.f32.mxu1 %v5251_v3  ;;  %v93_v30 = vld [vmem:[%s5209_s2 + $0x1b8] sm:$0xff]  ;;  %v94_v32 = vld [vmem:[%s5209_s2 + $0x1c0] sm:$0xff]  ;;  %v3244_v33 = vld [vmem:[%s5209_s2 + $0x68] sm:$0xff] }
  0x16   :  { %v95_v34 = vld [vmem:[%s5209_s2 + $0x1c8] sm:$0xff]  ;;  %v3257_v35 = vld [vmem:[%s5209_s2 + $0x70] sm:$0xff]  ;;  %v3270_v37 = vld [vmem:[%s5209_s2 + $0x78] sm:$0xff] }
  0x17   :  { %2383 = vmatmul.mubr.msk.f32.gmra.mrb[8].mxu0 %vm5217_vm0, %v3120_v15  ;;  %v96_v36 = vld [vmem:[%s5209_s2 + $0x1d0] sm:$0xff]  ;;  %v97_v38 = vld [vmem:[%s5209_s2 + $0x1d8] sm:$0xff]  ;;  %v3283_v39 = vld [vmem:[%s5209_s2 + $0x80] sm:$0xff] }
  0x18   :  { %2426 = vmatmul.mubr.msk.f32.gmra.mrb[10].mxu1 %vm5217_vm0, %v3112_v14  ;;  %389 = vmatprep.mubr.f32.mxu0 %v5251_v3  ;;  %v98_v40 = vld [vmem:[%s5209_s2 + $0x1e0] sm:$0xff]  ;;  %v3296_v41 = vld [vmem:[%s5209_s2 + $0x88] sm:$0xff]  ;;  %v3309_v43 = vld [vmem:[%s5209_s2 + $0x90] sm:$0xff] }
  0x19   :  { %647 = vmatprep.mubr.f32.mxu1 %v5251_v3  ;;  %v99_v42 = vld [vmem:[%s5209_s2 + $0x1e8] sm:$0xff]  ;;  %v100_v44 = vld [vmem:[%s5209_s2 + $0x1f0] sm:$0xff]  ;;  %v3322_v45 = vld [vmem:[%s5209_s2 + $0x98] sm:$0xff] }
  0x1a   :  { %v101_v46 = vld [vmem:[%s5209_s2 + $0x1f8] sm:$0xff]  ;;  %v3335_v47 = vld [vmem:[%s5209_s2 + $0xa0] sm:$0xff]  ;;  %v3345_v48 = vld [vmem:[%s5209_s2 + $0xa8] sm:$0xff] }
  0x1b   :  { %2384 = vmatmul.mubr.msk.f32.gmra.mrb[10].mxu0 %vm5217_vm0, %v3136_v17  ;;  %v3356_v49 = vld [vmem:[%s5209_s2 + $0xb0] sm:$0xff]  ;;  %v3367_v50 = vld [vmem:[%s5209_s2 + $0xb8] sm:$0xff]  ;;  %v3378_v51 = vld [vmem:[%s5209_s2 + $0xc0] sm:$0xff] }
  0x1c   :  { %2427 = vmatmul.mubr.msk.f32.gmra.mrb[12].mxu1 %vm5217_vm0, %v3128_v16  ;;  %395 = vmatprep.mubr.f32.mxu0 %v5251_v3  ;;  %v3389_v52 = vld [vmem:[%s5209_s2 + $0xc8] sm:$0xff]  ;;  %v3400_v53 = vld [vmem:[%s5209_s2 + $0xd0] sm:$0xff]  ;;  %v3411_v54 = vld [vmem:[%s5209_s2 + $0xd8] sm:$0xff] }
  0x1d   :  { %653 = vmatprep.mubr.f32.mxu1 %v5251_v3  ;;  %v3422_v55 = vld [vmem:[%s5209_s2 + $0xe0] sm:$0xff]  ;;  %v3433_v56 = vld [vmem:[%s5209_s2 + $0xe8] sm:$0xff]  ;;  %v3444_v57 = vld [vmem:[%s5209_s2 + $0xf0] sm:$0xff] }
  0x1e   :  { %v3455_v58 = vld [vmem:[%s5209_s2 + $0xf8] sm:$0xff]  ;;  %v3466_v59 = vld [vmem:[%s5209_s2 + $0x100] sm:$0xff]  ;;  %v3477_v60 = vld [vmem:[%s5209_s2 + $0x108] sm:$0xff] }
  0x1f   :  { %2385 = vmatmul.mubr.msk.f32.gmra.mrb[12].mxu0 %vm5217_vm0, %v3152_v19  ;;  %v3488_v61 = vld [vmem:[%s5209_s2 + $0x110] sm:$0xff]  ;;  %v3499_v62 = vld [vmem:[%s5209_s2 + $0x118] sm:$0xff]  ;;  %v3510_v63 = vld [vmem:[%s5209_s2 + $0x120] sm:$0xff] }
  0x20   :  { %2428 = vmatmul.mubr.msk.f32.gmra.mrb[14].mxu1 %vm5217_vm0, %v3144_v18  ;;  %401 = vmatprep.mubr.f32.mxu0 %v5251_v3  ;;  %v3521_v0 = vld [vmem:[%s5209_s2 + $0x128] sm:$0xff]  ;;  %v3532_v1 = vld [vmem:[%s5209_s2 + $0x130] sm:$0xff]  ;;  %v3543_v6 = vld [vmem:[%s5209_s2 + $0x138] sm:$0xff] }
  0x21   :  { %659 = vmatprep.mubr.f32.mxu1 %v5251_v3  ;;  %v3554_v7 = vld [vmem:[%s5209_s2 + $0x140] sm:$0xff] }
  0x23   :  { %2386 = vmatmul.mubr.msk.f32.gmra.mrb[14].mxu0 %vm5217_vm0, %v3166_v21 }
  0x24   :  { %2429 = vmatmul.mubr.msk.f32.gmra.mrb[16].mxu1 %vm5217_vm0, %v88_v20  ;;  %407 = vmatprep.mubr.f32.mxu0 %v5251_v3 }
  0x25   :  { %665 = vmatprep.mubr.f32.mxu1 %v5251_v3 }
  0x27   :  { %2387 = vmatmul.mubr.msk.f32.gmra.mrb[16].mxu0 %vm5217_vm0, %v3179_v23 }
  0x28   :  { %2430 = vmatmul.mubr.msk.f32.gmra.mrb[18].mxu1 %vm5217_vm0, %v89_v22  ;;  %413 = vmatprep.mubr.f32.mxu0 %v5251_v3 }
  0x29   :  { %671 = vmatprep.mubr.f32.mxu1 %v5251_v3 }
  0x2b   :  { %2388 = vmatmul.mubr.msk.f32.gmra.mrb[18].mxu0 %vm5217_vm0, %v3192_v25 }
  0x2c   :  { %2431 = vmatmul.mubr.msk.f32.gmra.mrb[20].mxu1 %vm5217_vm0, %v90_v24  ;;  %419 = vmatprep.mubr.f32.mxu0 %v5251_v3 }
  0x2d   :  { %677 = vmatprep.mubr.f32.mxu1 %v5251_v3 }
  0x2f   :  { %2389 = vmatmul.mubr.msk.f32.gmra.mrb[20].mxu0 %vm5217_vm0, %v3205_v27 }
  0x30   :  { %2432 = vmatmul.mubr.msk.f32.gmra.mrb[22].mxu1 %vm5217_vm0, %v91_v26  ;;  %425 = vmatprep.mubr.f32.mxu0 %v5251_v3  ;;  %v5372_v26 = vmov 0 }
  0x31   :  { %683 = vmatprep.mubr.f32.mxu1 %v5251_v3 }
  0x33   :  { %2390 = vmatmul.mubr.msk.f32.gmra.mrb[22].mxu0 %vm5217_vm0, %v3218_v29 }
  0x34   :  { %2433 = vmatmul.mubr.msk.f32.gmra.mrb[24].mxu1 %vm5217_vm0, %v92_v28  ;;  %431 = vmatprep.mubr.f32.mxu0 %v5251_v3 }
  0x35   :  { %689 = vmatprep.mubr.f32.mxu1 %v5251_v3 }
  0x37   :  { %2391 = vmatmul.mubr.msk.f32.gmra.mrb[24].mxu0 %vm5217_vm0, %v3231_v31 }
  0x38   :  { %2434 = vmatmul.mubr.msk.f32.gmra.mrb[26].mxu1 %vm5217_vm0, %v93_v30  ;;  %437 = vmatprep.mubr.f32.mxu0 %v5251_v3  ;;  %v5374_v30 = vmov 0 }
  0x39   :  { %695 = vmatprep.mubr.f32.mxu1 %v5251_v3 }
  0x3b   :  { %2392 = vmatmul.mubr.msk.f32.gmra.mrb[26].mxu0 %vm5217_vm0, %v3244_v33 }
  0x3c   :  { %2435 = vmatmul.mubr.msk.f32.gmra.mrb[28].mxu1 %vm5217_vm0, %v94_v32  ;;  %443 = vmatprep.mubr.f32.mxu0 %v5251_v3 }
  0x3d   :  { %701 = vmatprep.mubr.f32.mxu1 %v5251_v3 }
  0x3f   :  { %2393 = vmatmul.mubr.msk.f32.gmra.mrb[28].mxu0 %vm5217_vm0, %v3257_v35 }
  0x40   :  { %2436 = vmatmul.mubr.msk.f32.gmra.mrb[30].mxu1 %vm5217_vm0, %v95_v34  ;;  %449 = vmatprep.mubr.f32.mxu0 %v5251_v3 }
  0x41   :  { %707 = vmatprep.mubr.f32.mxu1 %v5251_v3 }
  0x43   :  { %2394 = vmatmul.mubr.msk.f32.gmra.mrb[30].mxu0 %vm5217_vm0, %v3270_v37 }
  0x44   :  { %2437 = vmatmul.mubr.msk.f32.gmra.mrb[32].mxu1 %vm5217_vm0, %v96_v36  ;;  %455 = vmatprep.mubr.f32.mxu0 %v5251_v3 }
  0x45   :  { %713 = vmatprep.mubr.f32.mxu1 %v5251_v3 }
  0x47   :  { %2395 = vmatmul.mubr.msk.f32.gmra.mrb[32].mxu0 %vm5217_vm0, %v3283_v39 }
  0x48   :  { %2438 = vmatmul.mubr.msk.f32.gmra.mrb[34].mxu1 %vm5217_vm0, %v97_v38  ;;  %461 = vmatprep.mubr.f32.mxu0 %v5251_v3 }
  0x49   :  { %719 = vmatprep.mubr.f32.mxu1 %v5251_v3 }
  0x4b   :  { %2396 = vmatmul.mubr.msk.f32.gmra.mrb[34].mxu0 %vm5217_vm0, %v3296_v41 }
  0x4c   :  { %2439 = vmatmul.mubr.msk.f32.gmra.mrb[36].mxu1 %vm5217_vm0, %v98_v40  ;;  %467 = vmatprep.mubr.f32.mxu0 %v5251_v3 }
  0x4d   :  { %725 = vmatprep.mubr.f32.mxu1 %v5251_v3 }
  0x4f   :  { %2397 = vmatmul.mubr.msk.f32.gmra.mrb[36].mxu0 %vm5217_vm0, %v3309_v43 }
  0x50   :  { %2440 = vmatmul.mubr.msk.f32.gmra.mrb[38].mxu1 %vm5217_vm0, %v99_v42  ;;  %473 = vmatprep.mubr.f32.mxu0 %v5251_v3 }
  0x51   :  { %731 = vmatprep.mubr.f32.mxu1 %v5251_v3 }
  0x53   :  { %2398 = vmatmul.mubr.msk.f32.gmra.mrb[38].mxu0 %vm5217_vm0, %v3322_v45 }
  0x54   :  { %2441 = vmatmul.mubr.msk.f32.gmra.mrb[40].mxu1 %vm5217_vm0, %v100_v44  ;;  %479 = vmatprep.mubr.f32.mxu0 %v5251_v3 }
  0x55   :  { %737 = vmatprep.mubr.f32.mxu1 %v5251_v3 }
  0x57   :  { %2399 = vmatmul.mubr.msk.f32.gmra.mrb[40].mxu0 %vm5217_vm0, %v3335_v47 }
  0x58   :  { %2442 = vmatmul.mubr.msk.f32.gmra.mrb[42].mxu1 %vm5217_vm0, %v101_v46  ;;  %485 = vmatprep.mubr.f32.mxu0 %v5251_v3 }
  0x59   :  { %808 = vmatprep.mubr.f32.mxu1 %v5251_v3 }
  0x5b   :  { %2400 = vmatmul.mubr.msk.f32.gmra.mrb[42].mxu0 %vm5217_vm0, %v3345_v48 }
  0x5c   :  { %2443 = vmatmul.mubr.msk.f32.vlgmr.msra.gmra.mrb[44].mxu1 %vm5217_vm0, %v3064_v8  ;;  %491 = vmatprep.mubr.f32.mxu0 %v5251_v3  ;;  %v3565_v8 = vld [vmem:[%s5209_s2 + $0x148] sm:$0xff] }
  0x5d   :  { %814 = vmatprep.mubr.f32.mxu1 %v5251_v3 }
  0x5f   :  { %2401 = vmatmul.mubr.msk.f32.gmra.mrb[44].mxu0 %vm5217_vm0, %v3356_v49 }
  0x60   :  { %2444 = vmatmul.mubr.msk.f32.gmra.mrb[46].mxu1 %vm5217_vm0, %v3072_v9  ;;  %497 = vmatprep.mubr.f32.mxu0 %v5251_v3  ;;  %v5246_v9 = vlaneseq }
  0x61   :  { %820 = vmatprep.mubr.f32.mxu1 %v5251_v3 }
  0x63   :  { %2402 = vmatmul.mubr.msk.f32.gmra.mrb[46].mxu0 %vm5217_vm0, %v3367_v50 }
  0x64   :  { %2445 = vmatmul.mubr.msk.f32.gmra.mrb[48].mxu1 %vm5217_vm0, %v3088_v11  ;;  %503 = vmatprep.mubr.f32.mxu0 %v5251_v3  ;;  %v3599_v11 = vshrl.u32 %v5246_v9, 7 }
  0x65   :  { %826 = vmatprep.mubr.f32.mxu1 %v5251_v3 }
  0x66   :  { %v1195_v22 = vadd.s32 8, %v3599_v11  ;;  %v1238_v24 = vadd.s32 352, %v3599_v11  ;;  %v1239_v28 = vadd.s32 360, %v3599_v11  ;;  %v1196_v40 = vadd.s32 16, %v3599_v11 }
  0x67   :  { %2403 = vmatmul.mubr.msk.f32.gmra.mrb[48].mxu0 %vm5217_vm0, %v3378_v51  ;;  %v1249_v9 = vadd.s32 440, %v3599_v11 }
  0x68   :  { %2446 = vmatmul.mubr.msk.f32.gmra.mrb[50].mxu1 %vm5217_vm0, %v3104_v13  ;;  %509 = vmatprep.mubr.f32.mxu0 %v5251_v3  ;;  %v1236_v13 = vadd.s32 336, %v3599_v11  ;;  %v1259_v34 = vcvt.s32.f32 %v1195_v22  ;;  %v1302_v36 = vcvt.s32.f32 %v1238_v24  ;;  %v1303_v38 = vcvt.s32.f32 %v1239_v28 }
  0x69   :  { %832 = vmatprep.mubr.f32.mxu1 %v5251_v3  ;;  %v1242_v24 = vadd.s32 384, %v3599_v11  ;;  %v5406_v28 = vmov 0 }
  0x6b   :  { %2404 = vmatmul.mubr.msk.f32.gmra.mrb[50].mxu0 %vm5217_vm0, %v3389_v52 }
  0x6c   :  { %2447 = vmatmul.mubr.msk.f32.gmra.mrb[52].mxu1 %vm5217_vm0, %v3120_v15  ;;  %515 = vmatprep.mubr.f32.mxu0 %v5251_v3  ;;  %v1237_v15 = vadd.s32 344, %v3599_v11 }
  0x6d   :  { %838 = vmatprep.mubr.f32.mxu1 %v5251_v3 }
  0x6f   :  { %2405 = vmatmul.mubr.msk.f32.gmra.mrb[52].mxu0 %vm5217_vm0, %v3400_v53 }
  0x70   :  { %2448 = vmatmul.mubr.msk.f32.gmra.mrb[54].mxu1 %vm5217_vm0, %v3136_v17  ;;  %521 = vmatprep.mubr.f32.mxu0 %v5251_v3 }
  0x71   :  { %844 = vmatprep.mubr.f32.mxu1 %v5251_v3 }
  0x73   :  { %2406 = vmatmul.mubr.msk.f32.gmra.mrb[54].mxu0 %vm5217_vm0, %v3411_v54 }
  0x74   :  { %2449 = vmatmul.mubr.msk.f32.gmra.mrb[56].mxu1 %vm5217_vm0, %v3152_v19  ;;  %527 = vmatprep.mubr.f32.mxu0 %v5251_v3  ;;  %v1300_v19 = vcvt.s32.f32 %v1236_v13 }
  0x75   :  { %850 = vmatprep.mubr.f32.mxu1 %v5251_v3 }
  0x77   :  { %2407 = vmatmul.mubr.msk.f32.gmra.mrb[56].mxu0 %vm5217_vm0, %v3422_v55 }
  0x78   :  { %2450 = vmatmul.mubr.msk.f32.gmra.mrb[58].mxu1 %vm5217_vm0, %v3166_v21  ;;  %533 = vmatprep.mubr.f32.mxu0 %v5251_v3  ;;  %v1301_v21 = vcvt.s32.f32 %v1237_v15  ;;  %v5398_v15 = vmov 0 }
  0x79   :  { %856 = vmatprep.mubr.f32.mxu1 %v5251_v3 }
  0x7b   :  { %2408 = vmatmul.mubr.msk.f32.gmra.mrb[58].mxu0 %vm5217_vm0, %v3433_v56 }
  0x7c   :  { %2451 = vmatmul.mubr.msk.f32.gmra.mrb[60].mxu1 %vm5217_vm0, %v3179_v23  ;;  %539 = vmatprep.mubr.f32.mxu0 %v5251_v3 }
  0x7d   :  { %862 = vmatprep.mubr.f32.mxu1 %v5251_v3 }
  0x7f   :  { %2409 = vmatmul.mubr.msk.f32.gmra.mrb[60].mxu0 %vm5217_vm0, %v3444_v57 }
  0x80   :  { %2452 = vmatmul.mubr.msk.f32.gmra.mrb[62].mxu1 %vm5217_vm0, %v3192_v25  ;;  %545 = vmatprep.mubr.f32.mxu0 %v5251_v3  ;;  %v5370_v25 = vmov 0 }
  0x81   :  { %868 = vmatprep.mubr.f32.mxu1 %v5251_v3 }
  0x83   :  { %2410 = vmatmul.mubr.msk.f32.gmra.mrb[62].mxu0 %vm5217_vm0, %v3455_v58 }
  0x84   :  { %2453 = vmatmul.mubr.msk.f32.gmra.mrb[64].mxu1 %vm5217_vm0, %v3205_v27  ;;  %551 = vmatprep.mubr.f32.mxu0 %v5251_v3 }
  0x85   :  { %874 = vmatprep.mubr.f32.mxu1 %v5251_v3 }
  0x87   :  { %2411 = vmatmul.mubr.msk.f32.gmra.mrb[64].mxu0 %vm5217_vm0, %v3466_v59 }
  0x88   :  { %2454 = vmatmul.mubr.msk.f32.gmra.mrb[66].mxu1 %vm5217_vm0, %v3218_v29  ;;  %557 = vmatprep.mubr.f32.mxu0 %v5251_v3  ;;  %v1258_v29 = vcvt.s32.f32 %v3599_v11 }
  0x89   :  { %880 = vmatprep.mubr.f32.mxu1 %v5251_v3 }
  0x8b   :  { %2412 = vmatmul.mubr.msk.f32.gmra.mrb[66].mxu0 %vm5217_vm0, %v3477_v60 }
  0x8c   :  { %2455 = vmatmul.mubr.msk.f32.gmra.mrb[68].mxu1 %vm5217_vm0, %v3231_v31  ;;  %563 = vmatprep.mubr.f32.mxu0 %v5251_v3  ;;  %v5376_v31 = vmov 0 }
  0x8d   :  { %886 = vmatprep.mubr.f32.mxu1 %v5251_v3 }
  0x8f   :  { %2413 = vmatmul.mubr.msk.f32.gmra.mrb[68].mxu0 %vm5217_vm0, %v3488_v61 }
  0x90   :  { %2456 = vmatmul.mubr.msk.f32.gmra.mrb[70].mxu1 %vm5217_vm0, %v3244_v33  ;;  %569 = vmatprep.mubr.f32.mxu0 %v5251_v3 }
  0x91   :  { %892 = vmatprep.mubr.f32.mxu1 %v5251_v3 }
  0x93   :  { %2414 = vmatmul.mubr.msk.f32.gmra.mrb[70].mxu0 %vm5217_vm0, %v3499_v62 }
  0x94   :  { %2457 = vmatmul.mubr.msk.f32.gmra.mrb[72].mxu1 %vm5217_vm0, %v3257_v35  ;;  %575 = vmatprep.mubr.f32.mxu0 %v5251_v3 }
  0x95   :  { %898 = vmatprep.mubr.f32.mxu1 %v5251_v3 }
  0x97   :  { %2415 = vmatmul.mubr.msk.f32.gmra.mrb[72].mxu0 %vm5217_vm0, %v3510_v63 }
  0x98   :  { %2458 = vmatmul.mubr.msk.f32.gmra.mrb[74].mxu1 %vm5217_vm0, %v3270_v37  ;;  %581 = vmatprep.mubr.f32.mxu0 %v5251_v3 }
  0x99   :  { %904 = vmatprep.mubr.f32.mxu1 %v5251_v3 }
  0x9b   :  { %2416 = vmatmul.mubr.msk.f32.gmra.mrb[74].mxu0 %vm5217_vm0, %v3521_v0 }
  0x9c   :  { %2459 = vmatmul.mubr.msk.f32.gmra.mrb[76].mxu1 %vm5217_vm0, %v3283_v39  ;;  %587 = vmatprep.mubr.f32.mxu0 %v5251_v3 }
  0x9d   :  { %910 = vmatprep.mubr.f32.mxu1 %v5251_v3 }
  0x9f   :  { %2417 = vmatmul.mubr.msk.f32.gmra.mrb[76].mxu0 %vm5217_vm0, %v3532_v1 }
  0xa0   :  { %2460 = vmatmul.mubr.msk.f32.gmra.mrb[78].mxu1 %vm5217_vm0, %v3296_v41  ;;  %593 = vmatprep.mubr.f32.mxu0 %v5251_v3  ;;  %v1218_v41 = vadd.s32 192, %v3599_v11 }
  0xa1   :  { %916 = vmatprep.mubr.f32.mxu1 %v5251_v3 }
  0xa3   :  { %2418 = vmatmul.mubr.msk.f32.gmra.mrb[78].mxu0 %vm5217_vm0, %v3543_v6 }
  0xa4   :  { %2461 = vmatmul.mubr.msk.f32.gmra.mrb[80].mxu1 %vm5217_vm0, %v3309_v43  ;;  %599 = vmatprep.mubr.f32.mxu0 %v5251_v3  ;;  %v1219_v43 = vadd.s32 200, %v3599_v11 }
  0xa5   :  { %922 = vmatprep.mubr.f32.mxu1 %v5251_v3 }
  0xa7   :  { %2419 = vmatmul.mubr.msk.f32.gmra.mrb[80].mxu0 %vm5217_vm0, %v3554_v7 }
  0xa8   :  { %2462 = vmatmul.mubr.msk.f32.gmra.mrb[82].mxu1 %vm5217_vm0, %v3322_v45  ;;  %605 = vmatprep.mubr.f32.mxu0 %v5251_v3  ;;  %v1197_v45 = vadd.s32 24, %v3599_v11 }
  0xa9   :  { %928 = vmatprep.mubr.f32.mxu1 %v5251_v3 }
  0xab   :  { %2420 = vmatmul.mubr.msk.f32.gmra.mrb[82].mxu0 %vm5217_vm0, %v3565_v8 }
  0xac   :  { %2463 = vmatmul.mubr.msk.f32.gmra.mrb[84].mxu1 %vm5217_vm0, %v3335_v47  ;;  %v1240_v47 = vadd.s32 368, %v3599_v11 }
  0xad   :  { %934 = vmatprep.mubr.f32.mxu1 %v5251_v3 }
  0xb0   :  { %2464 = vmatmul.mubr.msk.f32.gmra.mrb[86].mxu1 %vm5217_vm0, %v3345_v48  ;;  %v5602_v48 = vmov 0 }
  0xb1   :  { %940 = vmatprep.mubr.f32.mxu1 %v5251_v3 }
  0xb4   :  { %2465 = vmatmul.mubr.msk.f32.gmra.mrb[88].mxu1 %vm5217_vm0, %v3356_v49  ;;  %v5386_v49 = vmov 0 }
  0xb5   :  { %946 = vmatprep.mubr.f32.mxu1 %v5251_v3 }
  0xb8   :  { %2466 = vmatmul.mubr.msk.f32.gmra.mrb[90].mxu1 %vm5217_vm0, %v3367_v50  ;;  %v5389_v50 = vmov 0 }
  0xb9   :  { %952 = vmatprep.mubr.f32.mxu1 %v5251_v3 }
  0xbc   :  { %2467 = vmatmul.mubr.msk.f32.gmra.mrb[92].mxu1 %vm5217_vm0, %v3378_v51 }
  0xbd   :  { %958 = vmatprep.mubr.f32.mxu1 %v5251_v3 }
  0xc0   :  { %2468 = vmatmul.mubr.msk.f32.gmra.mrb[94].mxu1 %vm5217_vm0, %v3389_v52  ;;  %v1241_v52 = vadd.s32 376, %v3599_v11 }
  0xc1   :  { %964 = vmatprep.mubr.f32.mxu1 %v5251_v3 }
  0xc2   :  { %v1305_v13 = vcvt.s32.f32 %v1241_v52 }
  0xc4   :  { %2469 = vmatmul.mubr.msk.f32.gmra.mrb[96].mxu1 %vm5217_vm0, %v3400_v53  ;;  %v1260_v53 = vcvt.s32.f32 %v1196_v40 }
  0xc5   :  { %970 = vmatprep.mubr.f32.mxu1 %v5251_v3 }
  0xc8   :  { %2470 = vmatmul.mubr.msk.f32.gmra.mrb[98].mxu1 %vm5217_vm0, %v3411_v54  ;;  %v5392_v54 = vmov 0 }
  0xc9   :  { %976 = vmatprep.mubr.f32.mxu1 %v5251_v3 }
  0xcc   :  { %2471 = vmatmul.mubr.msk.f32.gmra.mrb[100].mxu1 %vm5217_vm0, %v3422_v55  ;;  %v5395_v55 = vmov 0 }
  0xcd   :  { %982 = vmatprep.mubr.f32.mxu1 %v5251_v3 }
  0xd0   :  { %2472 = vmatmul.mubr.msk.f32.gmra.mrb[102].mxu1 %vm5217_vm0, %v3433_v56 }
  0xd1   :  { %988 = vmatprep.mubr.f32.mxu1 %v5251_v3 }
  0xd4   :  { %2473 = vmatmul.mubr.msk.f32.gmra.mrb[104].mxu1 %vm5217_vm0, %v3444_v57 }
  0xd5   :  { %994 = vmatprep.mubr.f32.mxu1 %v5251_v3 }
  0xd7   :  { %v613_v17 = vpop.f32.mrb[0].mxu1 }
  0xd8   :  { %v615_v20 = vpop.f32.mrb[1].mxu1  ;;  %2474 = vmatmul.mubr.msk.f32.gmra.mrb[106].mxu1 %vm5217_vm0, %v3455_v58  ;;  %vm3612_vm1 = vcmp.eq.f32.partialorder %v613_v17, %v1300_v19  ;;  %v361_v32 = vpop.f32.mrb[0].mxu0  ;;  %v1261_v58 = vcvt.s32.f32 %v1197_v45  ;;  %v1198_v17 = vadd.s32 32, %v3599_v11 }
  0xd9   :  { %1000 = vmatprep.mubr.f32.mxu1 %v5251_v3  ;;  %v5371_v25 = vsel %vm3612_vm1, 4294967295, %v5370_v25  ;;  %vm3624_vm3 = vcmp.eq.f32.partialorder %v615_v20, %v1300_v19  ;;  %v363_v33 = vpop.f32.mrb[1].mxu0  ;;  %vm3643_vm7 = vcmp.eq.f32.partialorder %v361_v32, %v1258_v29  ;;  %v1220_v19 = vadd.s32 208, %v3599_v11 }
  0xda   :  { %v5375_v30 = vsel %vm3624_vm3, 4294967295, %v5374_v30  ;;  %vm3649_vm8 = vcmp.eq.f32.partialorder %v363_v33, %v1258_v29  ;;  %v5409_v29 = vmov 0  ;;  %v1243_v33 = vadd.s32 392, %v3599_v11 }
  0xdb   :  { %v619_v23 = vpop.f32.mrb[2].mxu1 }
  0xdc   :  { %vm3616_vm2 = vcmp.eq.f32.partialorder %v619_v23, %v1301_v21  ;;  %v621_v27 = vpop.f32.mrb[3].mxu1  ;;  %2475 = vmatmul.mubr.msk.f32.gmra.mrb[108].mxu1 %vm5217_vm0, %v3466_v59  ;;  %v367_v42 = vpop.f32.mrb[2].mxu0  ;;  %v1307_v45 = vcvt.s32.f32 %v1243_v33 }
  0xdd   :  { %v5373_v26 = vsel %vm3616_vm2, 4294967295, %v5372_v26  ;;  %vm3632_vm5 = vcmp.eq.f32.partialorder %v621_v27, %v1301_v21  ;;  %1006 = vmatprep.mubr.f32.mxu1 %v5251_v3  ;;  %vm3653_vm9 = vcmp.eq.f32.partialorder %v367_v42, %v1259_v34  ;;  %v369_v44 = vpop.f32.mrb[3].mxu0  ;;  %v1306_v42 = vcvt.s32.f32 %v1242_v24 }
  0xde   :  { %v5377_v31 = vsel %vm3632_vm5, 4294967295, %v5376_v31  ;;  %vm3663_vm11 = vcmp.eq.f32.partialorder %v369_v44, %v1259_v34  ;;  %v1262_v34 = vcvt.s32.f32 %v1198_v17  ;;  %v1245_v17 = vadd.s32 408, %v3599_v11 }
  0xdf   :  { %v625_v35 = vpop.f32.mrb[4].mxu1  ;;  %v5617_v27 = vmov 0  ;;  %v1221_v21 = vadd.s32 216, %v3599_v11 }
  0xe0   :  { %v627_v37 = vpop.f32.mrb[5].mxu1  ;;  %2476 = vmatmul.mubr.msk.f32.gmra.mrb[110].mxu1 %vm5217_vm0, %v3477_v60  ;;  %vm3667_vm12 = vcmp.eq.f32.partialorder %v625_v35, %v1302_v36  ;;  %v1304_v60 = vcvt.s32.f32 %v1240_v47  ;;  %v5413_v35 = vmov 0  ;;  %v1200_v47 = vadd.s32 48, %v3599_v11 }
  0xe1   :  { %1012 = vmatprep.mubr.f32.mxu1 %v5251_v3  ;;  %v5387_v49 = vsel %vm3667_vm12, 4294967295, %v5386_v49  ;;  %vm3682_vm15 = vcmp.eq.f32.partialorder %v627_v37, %v1302_v36  ;;  %v5416_v36 = vmov 0 }
  0xe2   :  { %5388 = vst [vmem:[#allocation6_spill] sm:$0xff] %v5387_v49  ;;  %v5393_v54 = vsel %vm3682_vm15, 4294967295, %v5392_v54  ;;  %v373_v56 = vpop.f32.mrb[4].mxu0 }
  0xe3   :  { %v631_v46 = vpop.f32.mrb[6].mxu1  ;;  %5394 = vst [vmem:[#allocation8_spill] sm:$0xff] %v5393_v54  ;;  %v375_v57 = vpop.f32.mrb[5].mxu0  ;;  %vm3701_vm4 = vcmp.eq.f32.partialorder %v373_v56, %v1260_v53 }
  0xe4   :  { %vm3671_vm13 = vcmp.eq.f32.partialorder %v631_v46, %v1303_v38  ;;  %v633_v51 = vpop.f32.mrb[7].mxu1  ;;  %2477 = vmatmul.mubr.msk.f32.gmra.mrb[112].mxu1 %vm5217_vm0, %v3488_v61  ;;  %v5399_v15 = vsel %vm3701_vm4, 4294967295, %v5398_v15  ;;  %vm3707_vm14 = vcmp.eq.f32.partialorder %v375_v57, %v1260_v53  ;;  %v5420_v46 = vmov 0 }
  0xe5   :  { %v5390_v50 = vsel %vm3671_vm13, 4294967295, %v5389_v50  ;;  %vm3690_vm6 = vcmp.eq.f32.partialorder %v633_v51, %v1303_v38  ;;  %1018 = vmatprep.mubr.f32.mxu1 %v5251_v3  ;;  %v5422_v51 = vmov 0  ;;  %v5424_v53 = vmov 0 }
  0xe6   :  { %5391 = vst [vmem:[#allocation7_spill] sm:$0xff] %v5390_v50  ;;  %v5396_v55 = vsel %vm3690_vm6, 4294967295, %v5395_v55  ;;  %v379_v20 = vpop.f32.mrb[6].mxu0  ;;  %vm5412_vm6 = vcmask 64512  }
  0xe7   :  { %5397 = vst [vmem:[#allocation9_spill] sm:$0xff] %v5396_v55  ;;  %v637_v59 = vpop.f32.mrb[8].mxu1  ;;  %vm3711_vm10 = vcmp.eq.f32.partialorder %v379_v20, %v1261_v58  ;;  %v381_v22 = vpop.f32.mrb[7].mxu0  ;;  %v1264_v20 = vcvt.s32.f32 %v1200_v47 }
  0xe8   :  { %v639_v61 = vpop.f32.mrb[9].mxu1  ;;  %2478 = vmatmul.mubr.msk.f32.gmra.mrb[114].mxu1 %vm5217_vm0, %v3499_v62  ;;  %v1199_v62 = vadd.s32 40, %v3599_v11  ;;  %vm3721_vm12 = vcmp.eq.f32.partialorder %v381_v22, %v1261_v58  ;;  %vm3725_vm13 = vcmp.eq.f32.partialorder %v637_v59, %v1304_v60  ;;  %vm5419_vm0 = vmmov %vm5412_vm6  ;;  %v1244_v58 = vadd.s32 400, %v3599_v11 }
  0xe9   :  { %1024 = vmatprep.mubr.f32.mxu1 %v5251_v3  ;;  %v5407_v28 = vsel %vm3725_vm13, 4294967295, %v5406_v28  ;;  %vm3740_vm1 = vcmp.eq.f32.partialorder %v639_v61, %v1304_v60  ;;  %v5426_v59 = vmov 0  ;;  %v5428_v60 = vmov 0  ;;  %vm5434_vm5 = vmmov %vm5419_vm0 }
  0xea   :  { %5408 = vst [vmem:[#allocation10_spill] sm:$0xff] %v5407_v28  ;;  %v5414_v35 = vsel %vm3740_vm1, 4294967295, %v5413_v35  ;;  %v1263_v38 = vcvt.s32.f32 %v1199_v62  ;;  %v5431_v61 = vmov 0  ;;  %v5435_v22 = vmov 0 }
  0xeb   :  { %v643_v23 = vpop.f32.mrb[10].mxu1  ;;  %5415 = vst [vmem:[#allocation12_spill] sm:$0xff] %v5414_v35  ;;  %v5438_v62 = vmov 0  ;;  %v1308_v33 = vcvt.s32.f32 %v1244_v58  ;;  %v2936_v35 = vld [vmem:[%s5209_s2 + $0x1a0] sm:$0xff] }
  0xec   :  { %vm3729_vm15 = vcmp.eq.f32.partialorder %v643_v23, %v1305_v13  ;;  %v645_v32 = vpop.f32.mrb[11].mxu1  ;;  %2479 = vmatmul.mubr.msk.f32.gmra.mrb[116].mxu1 %vm5412_vm6, %v3510_v63  ;;  %v385_v63 = vpop.f32.mrb[8].mxu0 }
  0xed   :  { %v5410_v29 = vsel %vm3729_vm15, 4294967295, %v5409_v29  ;;  %vm3748_vm3 = vcmp.eq.f32.partialorder %v645_v32, %v1305_v13  ;;  %1030 = vmatprep.mubr.f32.mxu1 %v5251_v3  ;;  %v387_v37 = vpop.f32.mrb[9].mxu0  ;;  %vm3759_vm2 = vcmp.eq.f32.partialorder %v385_v63, %v1262_v34  ;;  %v1309_v63 = vcvt.s32.f32 %v1245_v17 }
  0xee   :  { %5411 = vst [vmem:[#allocation11_spill] sm:$0xff] %v5410_v29  ;;  %v5417_v36 = vsel %vm3748_vm3, 4294967295, %v5416_v36  ;;  %v5421_v46 = vsel %vm3759_vm2, 4294967295, %v5420_v46  ;;  %vm3765_vm13 = vcmp.eq.f32.partialorder %v387_v37, %v1262_v34  ;;  %v391_v52 = vpop.f32.mrb[10].mxu0  ;;  %v5441_v37 = vmov 0 }
  0xef   :  { %5418 = vst [vmem:[#allocation13_spill] sm:$0xff] %v5417_v36  ;;  %v649_v40 = vpop.f32.mrb[12].mxu1  ;;  %v5423_v51 = vsel %vm3765_vm13, 4294967295, %v5422_v51  ;;  %vm3769_vm6 = vcmp.eq.f32.partialorder %v391_v52, %v1263_v38  ;;  %v393_v56 = vpop.f32.mrb[11].mxu0  ;;  %v1246_v52 = vadd.s32 416, %v3599_v11  ;;  %vm5455_vm13 = vmmov %vm5419_vm0 }
  0xf0   :  { %v651_v44 = vpop.f32.mrb[13].mxu1  ;;  %2480 = vmatmul.mubr.msk.f32.gmra.mrb[118].mxu1 %vm5419_vm0, %v3521_v0  ;;  %v5425_v53 = vsel %vm3769_vm6, 4294967295, %v5424_v53  ;;  %v1201_v0 = vadd.s32 56, %v3599_v11  ;;  %vm3779_vm15 = vcmp.eq.f32.partialorder %v393_v56, %v1263_v38  ;;  %vm3783_vm1 = vcmp.eq.f32.partialorder %v649_v40, %v1306_v42 }
  0xf1   :  { %1036 = vmatprep.mubr.f32.mxu1 %v5251_v3  ;;  %v5427_v59 = vsel %vm3779_vm15, 4294967295, %v5426_v59  ;;  %v5429_v60 = vsel %vm3783_vm1, 4294967295, %v5428_v60  ;;  %vm3798_vm2 = vcmp.eq.f32.partialorder %v651_v44, %v1306_v42  ;;  %v1202_v38 = vadd.s32 64, %v3599_v11 }
  0xf2   :  { %5430 = vst [vmem:[#allocation14_spill] sm:$0xff] %v5429_v60  ;;  %v5436_v22 = vsel %vm3798_vm2, 4294967295, %v5435_v22  ;;  %v1265_v24 = vcvt.s32.f32 %v1201_v0  ;;  %v5443_v40 = vmov 0  ;;  %v5445_v44 = vmov 0 }
  0xf3   :  { %v655_v57 = vpop.f32.mrb[14].mxu1  ;;  %5437 = vst [vmem:[#allocation16_spill] sm:$0xff] %v5436_v22  ;;  %v5447_v56 = vmov 0  ;;  %v5449_v0 = vmov 0  ;;  %v1266_v17 = vcvt.s32.f32 %v1202_v38  ;;  %v5462_v38 = vmov 0 }
  0xf4   :  { %vm3787_vm3 = vcmp.eq.f32.partialorder %v655_v57, %v1307_v45  ;;  %v657_v13 = vpop.f32.mrb[15].mxu1  ;;  %2481 = vmatmul.mubr.msk.f32.gmra.mrb[120].mxu1 %vm5434_vm5, %v3532_v1  ;;  %v397_v1 = vpop.f32.mrb[12].mxu0  ;;  %v5452_v57 = vmov 0 }
  0xf5   :  { %v5432_v61 = vsel %vm3787_vm3, 4294967295, %v5431_v61  ;;  %vm3806_vm4 = vcmp.eq.f32.partialorder %v657_v13, %v1307_v45  ;;  %1042 = vmatprep.mubr.f32.mxu1 %v5251_v3  ;;  %v399_v23 = vpop.f32.mrb[13].mxu0  ;;  %vm3817_vm6 = vcmp.eq.f32.partialorder %v397_v1, %v1264_v20  ;;  %v1247_v13 = vadd.s32 424, %v3599_v11 }
  0xf6   :  { %5433 = vst [vmem:[#allocation15_spill] sm:$0xff] %v5432_v61  ;;  %v5439_v62 = vsel %vm3806_vm4, 4294967295, %v5438_v62  ;;  %v5442_v37 = vsel %vm3817_vm6, 4294967295, %v5441_v37  ;;  %vm3823_vm1 = vcmp.eq.f32.partialorder %v399_v23, %v1264_v20  ;;  %v403_v42 = vpop.f32.mrb[14].mxu0  ;;  %v5456_v20 = vmov 0 }
  0xf7   :  { %5440 = vst [vmem:[#allocation17_spill] sm:$0xff] %v5439_v62  ;;  %v661_v32 = vpop.f32.mrb[16].mxu1  ;;  %v5444_v40 = vsel %vm3823_vm1, 4294967295, %v5443_v40  ;;  %vm3827_vm5 = vcmp.eq.f32.partialorder %v403_v42, %v1265_v24  ;;  %v405_v45 = vpop.f32.mrb[15].mxu0  ;;  %v5459_v1 = vmov 0  ;;  %v1204_v42 = vadd.s32 80, %v3599_v11  ;;  %vm5476_vm1 = vmmov %vm5419_vm0 }
  0xf8   :  { %v663_v34 = vpop.f32.mrb[17].mxu1  ;;  %2482 = vmatmul.mubr.msk.f32.gmra.mrb[122].mxu1 %vm5419_vm0, %v3543_v6  ;;  %v5446_v44 = vsel %vm3827_vm5, 4294967295, %v5445_v44  ;;  %v1203_v6 = vadd.s32 72, %v3599_v11  ;;  %vm3837_vm3 = vcmp.eq.f32.partialorder %v405_v45, %v1265_v24  ;;  %vm3841_vm2 = vcmp.eq.f32.partialorder %v661_v32, %v1308_v33  ;;  %v2934_v62 = vld [vmem:[%s5209_s2 + $0x190] sm:$0xff] }
  0xf9   :  { %1048 = vmatprep.mubr.f32.mxu1 %v5251_v3  ;;  %v5448_v56 = vsel %vm3837_vm3, 4294967295, %v5447_v56  ;;  %v5450_v0 = vsel %vm3841_vm2, 4294967295, %v5449_v0  ;;  %vm3856_vm6 = vcmp.eq.f32.partialorder %v663_v34, %v1308_v33  ;;  %v1310_v33 = vcvt.s32.f32 %v1246_v52 }
  0xfa   :  { %5451 = vst [vmem:[#allocation18_spill] sm:$0xff] %v5450_v0  ;;  %v5457_v20 = vsel %vm3856_vm6, 4294967295, %v5456_v20  ;;  %v1267_v24 = vcvt.s32.f32 %v1203_v6  ;;  %v5464_v45 = vmov 0  ;;  %v1255_v61 = vadd.s32 488, %v3599_v11 }
  0xfb   :  { %v667_v47 = vpop.f32.mrb[18].mxu1  ;;  %5458 = vst [vmem:[#allocation20_spill] sm:$0xff] %v5457_v20 }
  0xfc   :  { %vm3845_vm4 = vcmp.eq.f32.partialorder %v667_v47, %v1309_v63  ;;  %v669_v58 = vpop.f32.mrb[19].mxu1  ;;  %2483 = vmatmul.mubr.msk.f32.gmra.mrb[124].mxu1 %vm5455_vm13, %v3554_v7  ;;  %v409_v7 = vpop.f32.mrb[16].mxu0  ;;  %v5466_v47 = vmov 0 }
  0xfd   :  { %v5453_v57 = vsel %vm3845_vm4, 4294967295, %v5452_v57  ;;  %vm3864_vm15 = vcmp.eq.f32.partialorder %v669_v58, %v1309_v63  ;;  %1054 = vmatprep.mubr.f32.mxu1 %v5251_v3  ;;  %v411_v23 = vpop.f32.mrb[17].mxu0  ;;  %v1311_v63 = vcvt.s32.f32 %v1247_v13  ;;  %vm3875_vm5 = vcmp.eq.f32.partialorder %v409_v7, %v1266_v17 }
  0xfe   :  { %5454 = vst [vmem:[#allocation19_spill] sm:$0xff] %v5453_v57  ;;  %v5460_v1 = vsel %vm3864_vm15, 4294967295, %v5459_v1  ;;  %v5463_v38 = vsel %vm3875_vm5, 4294967295, %v5462_v38  ;;  %vm3881_vm2 = vcmp.eq.f32.partialorder %v411_v23, %v1266_v17  ;;  %v415_v6 = vpop.f32.mrb[18].mxu0  ;;  %v1248_v13 = vadd.s32 432, %v3599_v11 }
  0xff   :  { %5461 = vst [vmem:[#allocation21_spill] sm:$0xff] %v5460_v1  ;;  %v673_v32 = vpop.f32.mrb[20].mxu1  ;;  %v5465_v45 = vsel %vm3881_vm2, 4294967295, %v5464_v45  ;;  %vm3885_vm13 = vcmp.eq.f32.partialorder %v415_v6, %v1267_v24  ;;  %v417_v52 = vpop.f32.mrb[19].mxu0  ;;  %v5468_v17 = vmov 0  ;;  %v5470_v7 = vmov 0  ;;  %vm5498_vm2 = vmmov %vm5419_vm0 }
 0x100   :  { %v675_v34 = vpop.f32.mrb[21].mxu1  ;;  %2484 = vmatmul.mubr.msk.f32.gmra.mrb[126].mxu1 %vm5419_vm0, %v3565_v8  ;;  %v5467_v47 = vsel %vm3885_vm13, 4294967295, %v5466_v47  ;;  %v1205_v8 = vadd.s32 88, %v3599_v11  ;;  %vm3895_vm4 = vcmp.eq.f32.partialorder %v417_v52, %v1267_v24  ;;  %vm3899_vm6 = vcmp.eq.f32.partialorder %v673_v32, %v1310_v33 }
 0x101   :  { %1060 = vmatprep.mubr.f32.mxu1 %v5251_v3  ;;  %v5469_v17 = vsel %vm3895_vm4, 4294967295, %v5468_v17  ;;  %v5471_v7 = vsel %vm3899_vm6, 4294967295, %v5470_v7  ;;  %v5473_v23 = vmov 0  ;;  %v1268_v24 = vcvt.s32.f32 %v1204_v42 }
 0x102   :  { %5472 = vst [vmem:[#allocation22_spill] sm:$0xff] %v5471_v7  ;;  %vm3914_vm5 = vcmp.eq.f32.partialorder %v675_v34, %v1310_v33  ;;  %v5477_v32 = vmov 0  ;;  %v5480_v52 = vmov 0  ;;  %v1269_v34 = vcvt.s32.f32 %v1205_v8 }
 0x103   :  { %v679_v58 = vpop.f32.mrb[22].mxu1  ;;  %v5478_v32 = vsel %vm3914_vm5, 4294967295, %v5477_v32  ;;  %v1251_v57 = vadd.s32 456, %v3599_v11  ;;  %v1253_v1 = vadd.s32 472, %v3599_v11 }
 0x104   :  { %vm3903_vm15 = vcmp.eq.f32.partialorder %v679_v58, %v1311_v63  ;;  %v681_v6 = vpop.f32.mrb[23].mxu1  ;;  %2485 = vmatmul.mubr.msk.f32.gmra.mrb[128].mxu1 %vm5476_vm1, %v3035_v2  ;;  %5479 = vst [vmem:[#allocation24_spill] sm:$0xff] %v5478_v32  ;;  %v421_v2 = vpop.f32.mrb[20].mxu0  ;;  %v1312_v58 = vcvt.s32.f32 %v1248_v13  ;;  %v5486_v32 = vmov 0  ;;  %v5488_v13 = vmov 0 }
 0x105   :  { %v5474_v23 = vsel %vm3903_vm15, 4294967295, %v5473_v23  ;;  %vm3922_vm3 = vcmp.eq.f32.partialorder %v681_v6, %v1311_v63  ;;  %1066 = vmatprep.mubr.f32.mxu1 %v5251_v3  ;;  %v423_v33 = vpop.f32.mrb[21].mxu0  ;;  %v1313_v63 = vcvt.s32.f32 %v1249_v9  ;;  %vm3933_vm13 = vcmp.eq.f32.partialorder %v421_v2, %v1268_v24 }
 0x106   :  { %5475 = vst [vmem:[#allocation23_spill] sm:$0xff] %v5474_v23  ;;  %v5481_v52 = vsel %vm3922_vm3, 4294967295, %v5480_v52  ;;  %v5483_v6 = vmov 0  ;;  %v1206_v3 = vadd.s32 96, %v3599_v11  ;;  %v5485_v23 = vmov 0.0   ;;  %v427_v8 = vpop.f32.mrb[22].mxu0 }
 0x107   :  { %5482 = vst [vmem:[#allocation25_spill] sm:$0xff] %v5481_v52  ;;  %v685_v42 = vpop.f32.mrb[24].mxu1  ;;  %v5484_v6 = vsel %vm3933_vm13, 4294967295, %v5483_v6  ;;  %vm3939_vm6 = vcmp.eq.f32.partialorder %v423_v33, %v1268_v24  ;;  %vm3943_vm1 = vcmp.eq.f32.partialorder %v427_v8, %v1269_v34  ;;  %v429_v52 = vpop.f32.mrb[23].mxu0  ;;  %v1250_v2 = vadd.s32 448, %v3599_v11 }
 0x108   :  { %v687_v7 = vpop.f32.mrb[25].mxu1  ;;  %2486 = vmatmul.mubr.msk.f32.gmra.mrb[130].mxu1 %vm5419_vm0, %v3044_v4  ;;  %v5487_v32 = vsel %vm3939_vm6, 4294967295, %v5486_v32  ;;  %v5489_v13 = vsel %vm3943_vm1, 4294967295, %v5488_v13  ;;  %v1207_v4 = vadd.s32 104, %v3599_v11  ;;  %vm3953_vm15 = vcmp.eq.f32.partialorder %v429_v52, %v1269_v34  ;;  %vm5519_vm6 = vmmov %vm5419_vm0 }
 0x109   :  { %1072 = vmatprep.mubr.f32.mxu1 %v5485_v23  ;;  %v5490_v24 = vmov 0  ;;  %vm3957_vm5 = vcmp.eq.f32.partialorder %v685_v42, %v1312_v58  ;;  %v5492_v33 = vmov 0  ;;  %v5495_v8 = vmov 0 }
 0x10a   :  { %v5491_v24 = vsel %vm3953_vm15, 4294967295, %v5490_v24  ;;  %v5493_v33 = vsel %vm3957_vm5, 4294967295, %v5492_v33  ;;  %v1270_v52 = vcvt.s32.f32 %v1206_v3  ;;  %vm3972_vm13 = vcmp.eq.f32.partialorder %v687_v7, %v1312_v58 }
 0x10b   :  { %v691_v9 = vpop.f32.mrb[26].mxu1  ;;  %5494 = vst [vmem:[#allocation26_spill] sm:$0xff] %v5493_v33  ;;  %v5499_v34 = vmov 0  ;;  %v5502_v42 = vmov 0  ;;  %v1271_v7 = vcvt.s32.f32 %v1207_v4 }
 0x10c   :  { %vm3961_vm3 = vcmp.eq.f32.partialorder %v691_v9, %v1313_v63  ;;  %v693_v0 = vpop.f32.mrb[27].mxu1  ;;  %2487 = vmatmul.mubr.msk.f32.gmra.mrb[132].mxu1 %vm5498_vm2, %v3052_v5  ;;  %v5500_v34 = vsel %vm3972_vm13, 4294967295, %v5499_v34  ;;  %v433_v5 = vpop.f32.mrb[24].mxu0  ;;  %v1314_v9 = vcvt.s32.f32 %v1250_v2  ;;  %v5509_v2 = vmov 0 }
 0x10d   :  { %v5496_v8 = vsel %vm3961_vm3, 4294967295, %v5495_v8  ;;  %5501 = vst [vmem:[#allocation28_spill] sm:$0xff] %v5500_v34  ;;  %vm3980_vm4 = vcmp.eq.f32.partialorder %v693_v0, %v1313_v63  ;;  %1078 = vmatprep.mubr.f32.mxu1 %v5485_v23  ;;  %v435_v3 = vpop.f32.mrb[25].mxu0  ;;  %v1315_v0 = vcvt.s32.f32 %v1251_v57  ;;  %vm3991_vm1 = vcmp.eq.f32.partialorder %v433_v5, %v1270_v52 }
 0x10e   :  { %5497 = vst [vmem:[#allocation27_spill] sm:$0xff] %v5496_v8  ;;  %v5503_v42 = vsel %vm3980_vm4, 4294967295, %v5502_v42  ;;  %v5505_v63 = vmov 0  ;;  %v1208_v8 = vadd.s32 112, %v3599_v11  ;;  %vm3997_vm5 = vcmp.eq.f32.partialorder %v435_v3, %v1270_v52  ;;  %v439_v4 = vpop.f32.mrb[26].mxu0 }
 0x10f   :  { %5504 = vst [vmem:[#allocation29_spill] sm:$0xff] %v5503_v42  ;;  %v697_v58 = vpop.f32.mrb[28].mxu1  ;;  %v5506_v63 = vsel %vm3991_vm1, 4294967295, %v5505_v63  ;;  %v5507_v34 = vmov 0  ;;  %vm4001_vm2 = vcmp.eq.f32.partialorder %v439_v4, %v1271_v7  ;;  %v441_v42 = vpop.f32.mrb[27].mxu0  ;;  %v1252_v5 = vadd.s32 464, %v3599_v11 }
 0x110   :  { %v699_v33 = vpop.f32.mrb[29].mxu1  ;;  %2488 = vmatmul.mubr.msk.f32.gmra.mrb[134].mxu1 %vm5419_vm0, %v3080_v10  ;;  %v5508_v34 = vsel %vm3997_vm5, 4294967295, %v5507_v34  ;;  %v5510_v2 = vsel %vm4001_vm2, 4294967295, %v5509_v2  ;;  %v1209_v10 = vadd.s32 120, %v3599_v11  ;;  %vm4011_vm3 = vcmp.eq.f32.partialorder %v441_v42, %v1271_v7  ;;  %vm5540_vm5 = vmmov %vm5419_vm0 }
 0x111   :  { %1084 = vmatprep.mubr.f32.mxu1 %v5485_v23  ;;  %v5511_v52 = vmov 0  ;;  %vm4015_vm13 = vcmp.eq.f32.partialorder %v697_v58, %v1314_v9  ;;  %v5513_v3 = vmov 0  ;;  %v5516_v4 = vmov 0 }
 0x112   :  { %v5512_v52 = vsel %vm4011_vm3, 4294967295, %v5511_v52  ;;  %v5514_v3 = vsel %vm4015_vm13, 4294967295, %v5513_v3  ;;  %v1272_v42 = vcvt.s32.f32 %v1208_v8  ;;  %vm4030_vm1 = vcmp.eq.f32.partialorder %v699_v33, %v1314_v9 }
 0x113   :  { %v703_v57 = vpop.f32.mrb[30].mxu1  ;;  %5515 = vst [vmem:[#allocation30_spill] sm:$0xff] %v5514_v3  ;;  %v5520_v7 = vmov 0  ;;  %v5523_v58 = vmov 0  ;;  %v1273_v8 = vcvt.s32.f32 %v1209_v10 }
 0x114   :  { %vm4019_vm4 = vcmp.eq.f32.partialorder %v703_v57, %v1315_v0  ;;  %v705_v20 = vpop.f32.mrb[31].mxu1  ;;  %2489 = vmatmul.mubr.msk.f32.gmra.mrb[136].mxu1 %vm5519_vm6, %v3096_v12  ;;  %v5521_v7 = vsel %vm4030_vm1, 4294967295, %v5520_v7  ;;  %v445_v12 = vpop.f32.mrb[28].mxu0  ;;  %v1316_v57 = vcvt.s32.f32 %v1252_v5  ;;  %v5530_v5 = vmov 0 }
 0x115   :  { %v5517_v4 = vsel %vm4019_vm4, 4294967295, %v5516_v4  ;;  %5522 = vst [vmem:[#allocation32_spill] sm:$0xff] %v5521_v7  ;;  %vm4038_vm15 = vcmp.eq.f32.partialorder %v705_v20, %v1315_v0  ;;  %1090 = vmatprep.mubr.f32.mxu1 %v5485_v23  ;;  %v447_v33 = vpop.f32.mrb[29].mxu0  ;;  %v1317_v20 = vcvt.s32.f32 %v1253_v1  ;;  %vm4049_vm2 = vcmp.eq.f32.partialorder %v445_v12, %v1272_v42 }
 0x116   :  { %5518 = vst [vmem:[#allocation31_spill] sm:$0xff] %v5517_v4  ;;  %v5524_v58 = vsel %vm4038_vm15, 4294967295, %v5523_v58  ;;  %v5526_v0 = vmov 0  ;;  %v1210_v4 = vadd.s32 128, %v3599_v11  ;;  %vm4055_vm13 = vcmp.eq.f32.partialorder %v447_v33, %v1272_v42  ;;  %v451_v10 = vpop.f32.mrb[30].mxu0 }
 0x117   :  { %5525 = vst [vmem:[#allocation33_spill] sm:$0xff] %v5524_v58  ;;  %v709_v9 = vpop.f32.mrb[32].mxu1  ;;  %v5527_v0 = vsel %vm4049_vm2, 4294967295, %v5526_v0  ;;  %v5528_v7 = vmov 0  ;;  %vm4059_vm6 = vcmp.eq.f32.partialorder %v451_v10, %v1273_v8  ;;  %v453_v58 = vpop.f32.mrb[31].mxu0  ;;  %v1254_v12 = vadd.s32 480, %v3599_v11 }
 0x118   :  { %v711_v3 = vpop.f32.mrb[33].mxu1  ;;  %2490 = vmatmul.mubr.msk.f32.gmra.mrb[138].mxu1 %vm5419_vm0, %v3112_v14  ;;  %v5529_v7 = vsel %vm4055_vm13, 4294967295, %v5528_v7  ;;  %v5531_v5 = vsel %vm4059_vm6, 4294967295, %v5530_v5  ;;  %v1211_v14 = vadd.s32 136, %v3599_v11  ;;  %vm4069_vm4 = vcmp.eq.f32.partialorder %v453_v58, %v1273_v8  ;;  %vm5561_vm13 = vmmov %vm5419_vm0 }
 0x119   :  { %1096 = vmatprep.mubr.f32.mxu1 %v5485_v23  ;;  %v5532_v42 = vmov 0  ;;  %vm4073_vm1 = vcmp.eq.f32.partialorder %v709_v9, %v1316_v57  ;;  %v5534_v33 = vmov 0  ;;  %v5537_v10 = vmov 0 }
 0x11a   :  { %v5533_v42 = vsel %vm4069_vm4, 4294967295, %v5532_v42  ;;  %v5535_v33 = vsel %vm4073_vm1, 4294967295, %v5534_v33  ;;  %v1274_v58 = vcvt.s32.f32 %v1210_v4  ;;  %vm4088_vm2 = vcmp.eq.f32.partialorder %v711_v3, %v1316_v57 }
 0x11b   :  { %v715_v1 = vpop.f32.mrb[34].mxu1  ;;  %5536 = vst [vmem:[#allocation34_spill] sm:$0xff] %v5535_v33  ;;  %v5541_v8 = vmov 0  ;;  %v5544_v9 = vmov 0  ;;  %v1275_v4 = vcvt.s32.f32 %v1211_v14 }
 0x11c   :  { %vm4077_vm15 = vcmp.eq.f32.partialorder %v715_v1, %v1317_v20  ;;  %v717_v60 = vpop.f32.mrb[35].mxu1  ;;  %2491 = vmatmul.mubr.msk.f32.gmra.mrb[140].mxu1 %vm5540_vm5, %v3128_v16  ;;  %v5542_v8 = vsel %vm4088_vm2, 4294967295, %v5541_v8  ;;  %v457_v16 = vpop.f32.mrb[32].mxu0  ;;  %v1318_v1 = vcvt.s32.f32 %v1254_v12  ;;  %v5551_v12 = vmov 0 }
 0x11d   :  { %v5538_v10 = vsel %vm4077_vm15, 4294967295, %v5537_v10  ;;  %5543 = vst [vmem:[#allocation36_spill] sm:$0xff] %v5542_v8  ;;  %vm4096_vm3 = vcmp.eq.f32.partialorder %v717_v60, %v1317_v20  ;;  %1102 = vmatprep.mubr.f32.mxu1 %v5485_v23  ;;  %v459_v3 = vpop.f32.mrb[33].mxu0  ;;  %v1319_v60 = vcvt.s32.f32 %v1255_v61  ;;  %vm4107_vm6 = vcmp.eq.f32.partialorder %v457_v16, %v1274_v58 }
 0x11e   :  { %5539 = vst [vmem:[#allocation35_spill] sm:$0xff] %v5538_v10  ;;  %v5545_v9 = vsel %vm4096_vm3, 4294967295, %v5544_v9  ;;  %v5547_v20 = vmov 0  ;;  %v1212_v10 = vadd.s32 144, %v3599_v11  ;;  %vm4113_vm1 = vcmp.eq.f32.partialorder %v459_v3, %v1274_v58  ;;  %v463_v14 = vpop.f32.mrb[34].mxu0 }
 0x11f   :  { %5546 = vst [vmem:[#allocation37_spill] sm:$0xff] %v5545_v9  ;;  %v721_v57 = vpop.f32.mrb[36].mxu1  ;;  %v5548_v20 = vsel %vm4107_vm6, 4294967295, %v5547_v20  ;;  %v5549_v8 = vmov 0  ;;  %vm4117_vm5 = vcmp.eq.f32.partialorder %v463_v14, %v1275_v4  ;;  %v465_v9 = vpop.f32.mrb[35].mxu0  ;;  %v1256_v16 = vadd.s32 496, %v3599_v11 }
 0x120   :  { %v723_v33 = vpop.f32.mrb[37].mxu1  ;;  %2492 = vmatmul.mubr.msk.f32.gmra.mrb[142].mxu1 %vm5419_vm0, %v3144_v18  ;;  %v5550_v8 = vsel %vm4113_vm1, 4294967295, %v5549_v8  ;;  %v5552_v12 = vsel %vm4117_vm5, 4294967295, %v5551_v12  ;;  %v1213_v18 = vadd.s32 152, %v3599_v11  ;;  %vm4127_vm15 = vcmp.eq.f32.partialorder %v465_v9, %v1275_v4  ;;  %vm5568_vm5 = vmmov %vm5419_vm0 }
 0x121   :  { %1108 = vmatprep.mubr.f32.mxu1 %v5485_v23  ;;  %v5553_v58 = vmov 0  ;;  %vm4131_vm2 = vcmp.eq.f32.partialorder %v721_v57, %v1318_v1  ;;  %v5555_v3 = vmov 0  ;;  %v5558_v14 = vmov 0  ;;  %vm5583_vm1 = vmmov %vm5568_vm5 }
 0x122   :  { %v5554_v58 = vsel %vm4127_vm15, 4294967295, %v5553_v58  ;;  %v5556_v3 = vsel %vm4131_vm2, 4294967295, %v5555_v3  ;;  %v1257_v9 = vadd.s32 504, %v3599_v11  ;;  %v1276_v4 = vcvt.s32.f32 %v1212_v10 }
 0x123   :  { %v727_v61 = vpop.f32.mrb[38].mxu1  ;;  %5557 = vst [vmem:[#allocation38_spill] sm:$0xff] %v5556_v3  ;;  %vm4148_vm6 = vcmp.eq.f32.partialorder %v723_v33, %v1318_v1  ;;  %v5562_v57 = vmov 0  ;;  %v1277_v10 = vcvt.s32.f32 %v1213_v18  ;;  %v1320_v28 = vcvt.s32.f32 %v1256_v16 }
 0x124   :  { %vm4135_vm3 = vcmp.eq.f32.partialorder %v727_v61, %v1319_v60  ;;  %v729_v22 = vpop.f32.mrb[39].mxu1  ;;  %2493 = vmatmul.mubr.msk.f32.gmra.mrb[144].mxu1 %vm5561_vm13, %v2934_v62  ;;  %v5563_v57 = vsel %vm4148_vm6, 4294967295, %v5562_v57  ;;  %v5565_v61 = vmov 0  ;;  %v469_v62 = vpop.f32.mrb[36].mxu0 }
 0x125   :  { %v5559_v14 = vsel %vm4135_vm3, 4294967295, %v5558_v14  ;;  %5564 = vst [vmem:[#allocation40_spill] sm:$0xff] %v5563_v57  ;;  %vm4156_vm4 = vcmp.eq.f32.partialorder %v729_v22, %v1319_v60  ;;  %1114 = vmatprep.mubr.f32.mxu1 %v5485_v23  ;;  %v471_v33 = vpop.f32.mrb[37].mxu0  ;;  %v2935_v22 = vld [vmem:[%s5209_s2 + $0x198] sm:$0xff]  ;;  %v1321_v60 = vcvt.s32.f32 %v1257_v9  ;;  %vm4169_vm0 = vcmp.eq.f32.partialorder %v469_v62, %v1276_v4 }
 0x126   :  { %5560 = vst [vmem:[#allocation39_spill] sm:$0xff] %v5559_v14  ;;  %v5566_v61 = vsel %vm4156_vm4, 4294967295, %v5565_v61  ;;  %v5569_v14 = vmov 0  ;;  %v1214_v57 = vadd.s32 160, %v3599_v11  ;;  %vm4175_vm13 = vcmp.eq.f32.partialorder %v471_v33, %v1276_v4  ;;  %v475_v16 = vpop.f32.mrb[38].mxu0 }
 0x127   :  { %5567 = vst [vmem:[#allocation41_spill] sm:$0xff] %v5566_v61  ;;  %v733_v1 = vpop.f32.mrb[40].mxu1  ;;  %v5570_v14 = vsel %vm4169_vm0, 4294967295, %v5569_v14  ;;  %vm4179_vm2 = vcmp.eq.f32.partialorder %v475_v16, %v1277_v10  ;;  %v5573_v61 = vmov 0  ;;  %v477_v29 = vpop.f32.mrb[39].mxu0  ;;  %v1215_v9 = vadd.s32 168, %v3599_v11 }
 0x128   :  { %v735_v3 = vpop.f32.mrb[41].mxu1  ;;  %2494 = vmatmul.mubr.msk.f32.gmra.mrb[146].mxu1 %vm5568_vm5, %v2935_v22  ;;  %v5574_v61 = vsel %vm4179_vm2, 4294967295, %v5573_v61  ;;  %vm4188_vm3 = vcmp.eq.f32.partialorder %v477_v29, %v1277_v10  ;;  %vm4192_vm6 = vcmp.eq.f32.partialorder %v733_v1, %v1320_v28  ;;  %v5577_v4 = vmov 0  ;;  %vm5590_vm2 = vmmov %vm5583_vm1 }
 0x129   :  { %1120 = vmatprep.mubr.f32.mxu1 %v5485_v23  ;;  %v5578_v4 = vsel %vm4192_vm6, 4294967295, %v5577_v4  ;;  %v5580_v33 = vmov 0  ;;  %v1278_v29 = vcvt.s32.f32 %v1214_v57  ;;  %vm4208_vm0 = vcmp.eq.f32.partialorder %v735_v3, %v1320_v28 }
 0x12a   :  { %5579 = vst [vmem:[#allocation42_spill] sm:$0xff] %v5578_v4  ;;  %v5584_v10 = vmov 0  ;;  %v5587_v1 = vmov 0  ;;  %v1279_v3 = vcvt.s32.f32 %v1215_v9  ;;  %v2937_v4 = vld [vmem:[%s5209_s2 + $0x1a8] sm:$0xff] }
 0x12b   :  { %v739_v62 = vpop.f32.mrb[42].mxu1  ;;  %v5585_v10 = vsel %vm4208_vm0, 4294967295, %v5584_v10  ;;  %vm5599_vm0 = vmmov %vm5590_vm2 }
 0x12c   :  { %vm4196_vm4 = vcmp.eq.f32.partialorder %v739_v62, %v1321_v60  ;;  %v741_v16 = vpop.f32.mrb[43].mxu1  ;;  %2495 = vmatmul.mubr.msk.f32.gmra.mrb[148].mxu1 %vm5583_vm1, %v2936_v35  ;;  %5586 = vst [vmem:[#allocation44_spill] sm:$0xff] %v5585_v10  ;;  %v481_v35 = vpop.f32.mrb[40].mxu0 }
 0x12d   :  { %v5581_v33 = vsel %vm4196_vm4, 4294967295, %v5580_v33  ;;  %vm4216_vm15 = vcmp.eq.f32.partialorder %v741_v16, %v1321_v60  ;;  %1126 = vmatprep.mubr.f32.mxu1 %v5485_v23  ;;  %v483_v28 = vpop.f32.mrb[41].mxu0  ;;  %vm4229_vm5 = vcmp.eq.f32.partialorder %v481_v35, %v1278_v29  ;;  %v5591_v60 = vmov 0 }
 0x12e   :  { %5582 = vst [vmem:[#allocation43_spill] sm:$0xff] %v5581_v33  ;;  %v5588_v1 = vsel %vm4216_vm15, 4294967295, %v5587_v1  ;;  %v5592_v60 = vsel %vm4229_vm5, 4294967295, %v5591_v60  ;;  %v1216_v16 = vadd.s32 176, %v3599_v11  ;;  %vm4235_vm6 = vcmp.eq.f32.partialorder %v483_v28, %v1278_v29  ;;  %v487_v9 = vpop.f32.mrb[42].mxu0  ;;  %vm5601_vm15 = vmpackc.low %vm3653_vm9, %vm3643_vm7 }
 0x12f   :  { %5589 = vst [vmem:[#allocation45_spill] sm:$0xff] %v5588_v1  ;;  %v810_v57 = vpop.f32.mrb[44].mxu1  ;;  %vm4239_vm1 = vcmp.eq.f32.partialorder %v487_v9, %v1279_v3  ;;  %v489_v1 = vpop.f32.mrb[43].mxu0  ;;  %v2938_v9 = vld [vmem:[%s5209_s2 + $0x1b0] sm:$0xff]  ;;  %vm5613_vm7 = vnez %v5399_v15 }
 0x130   :  { %v812_v62 = vpop.f32.mrb[45].mxu1  ;;  %2496 = vmatmul.mubr.msk.f32.gmra.mrb[150].mxu1 %vm5590_vm2, %v2937_v4  ;;  %v1217_v4 = vadd.s32 184, %v3599_v11  ;;  %vm4248_vm4 = vcmp.eq.f32.partialorder %v489_v1, %v1279_v3  ;;  %v1280_v49 = vcvt.s32.f32 %v1216_v16 }
 0x131   :  { %1132 = vmatprep.mubr.f32.mxu1 %v5485_v23 }
 0x132   :  { %v493_v1 = vpop.f32.mrb[44].mxu0  ;;  %v1281_v54 = vcvt.s32.f32 %v1217_v4  ;;  %v5606_v4 = vmov 0 }
 0x133   :  { %v816_v35 = vpop.f32.mrb[46].mxu1  ;;  %v495_v3 = vpop.f32.mrb[45].mxu0  ;;  %vm4278_vm5 = vcmp.eq.f32.partialorder %v493_v1, %v1280_v49 }
 0x134   :  { %v2641_v29 = vpack.c.bf16 %v816_v35, %v810_v57  ;;  %v818_v28 = vpop.f32.mrb[47].mxu1  ;;  %2497 = vmatmul.mubr.msk.f32.gmra.mrb[152].mxu1 %vm5599_vm0, %v2938_v9  ;;  %v1579_v57 = vld [vmem:[%s5210_s3 + $0x8] sm:$0xff]  ;;  %vm5600_vm0 = vmpackc.low %vm3663_vm11, %vm3649_vm8  ;;  %v5603_v48 = vsel %vm4278_vm5, 4294967295, %v5602_v48  ;;  %vm4284_vm8 = vcmp.eq.f32.partialorder %v495_v3, %v1280_v49  ;;  %v2940_v3 = vld [vmem:[%s5209_s2 + $0x1c0] sm:$0xff] }
 0x135   :  { %v2638_v50 = vpack.c.bf16 %v818_v28, %v812_v62  ;;  %1138 = vmatprep.mubr.f32.mxu1 %v5485_v23  ;;  %1734 = vmatprep.mubr.f32.mxu0 %v1579_v57  ;;  %v2939_v62 = vld [vmem:[%s5209_s2 + $0x1b8] sm:$0xff]  ;;  %v1282_v57 = vcvt.s32.f32 %v1218_v41 }
 0x136   :  { %v499_v16 = vpop.f32.mrb[46].mxu0 }
 0x137   :  { %v822_v35 = vpop.f32.mrb[48].mxu1  ;;  %2640 = vmatprep.subr.msk.bf16.mxu0 %vm5600_vm0, %v2638_v50  ;;  %vm4288_vm11 = vcmp.eq.f32.partialorder %v499_v16, %v1281_v54  ;;  %v501_v39 = vpop.f32.mrb[47].mxu0  ;;  %vm5611_vm0 = vmpackc.low %vm3721_vm12, %vm3707_vm14 }
 0x138   :  { %v824_v9 = vpop.f32.mrb[49].mxu1  ;;  %2498 = vmatmul.mubr.msk.f32.gmra.mrb[154].mxu1 %vm5590_vm2, %v2939_v62  ;;  %2643 = vmatpush1.bf16.msk.msra.mxu0 %vm5601_vm15, %v2641_v29  ;;  %v5607_v4 = vsel %vm4288_vm11, 4294967295, %v5606_v4  ;;  %vm4297_vm9 = vcmp.eq.f32.partialorder %v501_v39, %v1281_v54  ;;  %vm5610_vm15 = vmmov %vm5590_vm2  ;;  %v1283_v39 = vcvt.s32.f32 %v1219_v43  ;;  %v5619_v43 = vmov 0 }
 0x139   :  { %1144 = vmatprep.mubr.f32.mxu1 %v5485_v23 }
 0x13a   :  { %v505_v54 = vpop.f32.mrb[48].mxu0 }
 0x13b   :  { %v828_v29 = vpop.f32.mrb[50].mxu1  ;;  %v507_v16 = vpop.f32.mrb[49].mxu0  ;;  %vm4324_vm5 = vcmp.eq.f32.partialorder %v505_v54, %v1282_v57  ;;  %v2942_v54 = vld [vmem:[%s5209_s2 + $0x1d0] sm:$0xff] }
 0x13c   :  { %v2647_v49 = vpack.c.bf16 %v828_v29, %v822_v35  ;;  %v830_v1 = vpop.f32.mrb[51].mxu1  ;;  %2499 = vmatmul.mubr.msk.f32.gmra.mrb[156].mxu1 %vm5610_vm15, %v2940_v3  ;;  %v2941_v3 = vld [vmem:[%s5209_s2 + $0x1c8] sm:$0xff]  ;;  %vm5612_vm15 = vmmov %vm5590_vm2  ;;  %vm4330_vm12 = vcmp.eq.f32.partialorder %v507_v16, %v1282_v57  ;;  %v1284_v16 = vcvt.s32.f32 %v1220_v19 }
 0x13d   :  { %v2644_v62 = vpack.c.bf16 %v830_v1, %v824_v9  ;;  %1150 = vmatprep.mubr.f32.mxu1 %v5485_v23  ;;  %vm5614_vm2 = vmpackc.low %vm3711_vm10, %vm5613_vm7  ;;  %v5615_v9 = vmov 0  ;;  %v5618_v27 = vsel %vm4330_vm12, 4294967295, %v5617_v27  ;;  %v5621_v1 = vmov 0 }
 0x13e   :  { %v5616_v9 = vsel %vm4324_vm5, 4294967295, %v5615_v9  ;;  %v511_v41 = vpop.f32.mrb[50].mxu0  ;;  %vm5625_vm10 = vnez %v5423_v51  ;;  %v1222_v51 = vadd.s32 224, %v3599_v11 }
 0x13f   :  { %v834_v35 = vpop.f32.mrb[52].mxu1  ;;  %2646 = vmatprep.subr.msk.bf16.mxu0 %vm5611_vm0, %v2644_v62  ;;  %vm4334_vm14 = vcmp.eq.f32.partialorder %v511_v41, %v1283_v39  ;;  %v513_v15 = vpop.f32.mrb[51].mxu0  ;;  %vm5627_vm0 = vnez %v5425_v53  ;;  %v1223_v53 = vadd.s32 232, %v3599_v11 }
 0x140   :  { %v836_v29 = vpop.f32.mrb[53].mxu1  ;;  %2500 = vmatmul.mubr.msk.f32.gmra.mrb[158].mxu1 %vm5612_vm15, %v2941_v3  ;;  %2649 = vmatpush1.bf16.msk.msra.mxu0 %vm5614_vm2, %v2647_v49  ;;  %v5620_v43 = vsel %vm4334_vm14, 4294967295, %v5619_v43  ;;  %vm4343_vm7 = vcmp.eq.f32.partialorder %v513_v15, %v1283_v39  ;;  %vm5623_vm2 = vmmov %vm5612_vm15  ;;  %v1285_v15 = vcvt.s32.f32 %v1221_v21  ;;  %vm5624_vm15 = vnez %v5427_v59 }
 0x141   :  { %1156 = vmatprep.mubr.f32.mxu1 %v5485_v23  ;;  %v5622_v1 = vsel %vm4343_vm7, 4294967295, %v5621_v1  ;;  %vm5626_vm5 = vmpackc.low %vm5624_vm15, %vm5625_vm10  ;;  %vm5628_vm14 = vnez %v5421_v46  ;;  %v5632_v59 = vmov 0  ;;  %v5634_v21 = vmov 0 }
 0x142   :  { %v517_v39 = vpop.f32.mrb[52].mxu0  ;;  %vm5629_vm12 = vmpackc.low %vm5627_vm0, %vm5628_vm14  ;;  %vm5642_vm15 = vnez %v5446_v44  ;;  %v1225_v44 = vadd.s32 248, %v3599_v11 }
 0x143   :  { %v840_v49 = vpop.f32.mrb[54].mxu1  ;;  %v519_v41 = vpop.f32.mrb[53].mxu0  ;;  %vm4370_vm7 = vcmp.eq.f32.partialorder %v517_v39, %v1284_v16  ;;  %v2944_v39 = vld [vmem:[%s5209_s2 + $0x1e0] sm:$0xff]  ;;  %vm5638_vm0 = vmmov %vm5623_vm2 }
 0x144   :  { %v2653_v57 = vpack.c.bf16 %v840_v49, %v834_v35  ;;  %v842_v62 = vpop.f32.mrb[55].mxu1  ;;  %2501 = vmatmul.mubr.msk.f32.gmra.mrb[160].mxu1 %vm5623_vm2, %v2942_v54  ;;  %v2943_v54 = vld [vmem:[%s5209_s2 + $0x1d8] sm:$0xff] }
 0x145   :  { %v2650_v3 = vpack.c.bf16 %v842_v62, %v836_v29  ;;  %1162 = vmatprep.mubr.f32.mxu1 %v5485_v23  ;;  %v5630_v29 = vmov 0  ;;  %v5636_v62 = vmov 0 }
 0x146   :  { %v5631_v29 = vsel %vm4370_vm7, 4294967295, %v5630_v29  ;;  %v523_v19 = vpop.f32.mrb[54].mxu0 }
 0x147   :  { %v846_v35 = vpop.f32.mrb[56].mxu1  ;;  %2652 = vmatprep.subr.msk.bf16.mxu0 %vm5626_vm5, %v2650_v3  ;;  %vm4376_vm5 = vcmp.eq.f32.partialorder %v519_v41, %v1284_v16  ;;  %vm4380_vm10 = vcmp.eq.f32.partialorder %v523_v19, %v1285_v15  ;;  %v525_v46 = vpop.f32.mrb[55].mxu0  ;;  %v1286_v41 = vcvt.s32.f32 %v1222_v51 }
 0x148   :  { %v848_v49 = vpop.f32.mrb[57].mxu1  ;;  %2502 = vmatmul.mubr.msk.f32.gmra.mrb[162].mxu1 %vm5623_vm2, %v2943_v54  ;;  %2655 = vmatpush1.bf16.msk.msra.mxu0 %vm5629_vm12, %v2653_v57  ;;  %v5633_v59 = vsel %vm4376_vm5, 4294967295, %v5632_v59  ;;  %v5635_v21 = vsel %vm4380_vm10, 4294967295, %v5634_v21  ;;  %vm4389_vm14 = vcmp.eq.f32.partialorder %v525_v46, %v1285_v15  ;;  %v1287_v46 = vcvt.s32.f32 %v1223_v53 }
 0x149   :  { %1168 = vmatprep.mubr.f32.mxu1 %v5485_v23  ;;  %v5637_v62 = vsel %vm4389_vm14, 4294967295, %v5636_v62  ;;  %vm5639_vm2 = vnez %v5448_v56  ;;  %vm5640_vm12 = vnez %v5444_v40  ;;  %vm5643_vm10 = vnez %v5442_v37 }
 0x14a   :  { %v529_v15 = vpop.f32.mrb[56].mxu0  ;;  %vm5641_vm7 = vmpackc.low %vm5639_vm2, %vm5640_vm12  ;;  %v1224_v40 = vadd.s32 240, %v3599_v11  ;;  %v5647_v56 = vmov 0  ;;  %v5649_v53 = vmov 0  ;;  %vm5657_vm2 = vnez %v5467_v47 }
 0x14b   :  { %v852_v57 = vpop.f32.mrb[58].mxu1  ;;  %v531_v19 = vpop.f32.mrb[57].mxu0  ;;  %vm5644_vm5 = vmpackc.low %vm5642_vm15, %vm5643_vm10  ;;  %vm4416_vm14 = vcmp.eq.f32.partialorder %v529_v15, %v1286_v41  ;;  %v2946_v15 = vld [vmem:[%s5209_s2 + $0x1f0] sm:$0xff]  ;;  %v1227_v47 = vadd.s32 264, %v3599_v11 }
 0x14c   :  { %v2659_v16 = vpack.c.bf16 %v852_v57, %v846_v35  ;;  %v854_v3 = vpop.f32.mrb[59].mxu1  ;;  %2503 = vmatmul.mubr.msk.f32.gmra.mrb[164].mxu1 %vm5638_vm0, %v2944_v39  ;;  %v2945_v39 = vld [vmem:[%s5209_s2 + $0x1e8] sm:$0xff]  ;;  %vm5653_vm15 = vmmov %vm5638_vm0 }
 0x14d   :  { %v2656_v54 = vpack.c.bf16 %v854_v3, %v848_v49  ;;  %1174 = vmatprep.mubr.f32.mxu1 %v5485_v23  ;;  %v5645_v49 = vmov 0  ;;  %v5651_v3 = vmov 0 }
 0x14e   :  { %v5646_v49 = vsel %vm4416_vm14, 4294967295, %v5645_v49  ;;  %v535_v51 = vpop.f32.mrb[58].mxu0 }
 0x14f   :  { %v858_v35 = vpop.f32.mrb[60].mxu1  ;;  %2658 = vmatprep.subr.msk.bf16.mxu0 %vm5641_vm7, %v2656_v54  ;;  %vm4422_vm7 = vcmp.eq.f32.partialorder %v531_v19, %v1286_v41  ;;  %vm4426_vm12 = vcmp.eq.f32.partialorder %v535_v51, %v1287_v46  ;;  %v537_v37 = vpop.f32.mrb[59].mxu0  ;;  %v1288_v19 = vcvt.s32.f32 %v1224_v40 }
 0x150   :  { %v860_v57 = vpop.f32.mrb[61].mxu1  ;;  %2504 = vmatmul.mubr.msk.f32.gmra.mrb[166].mxu1 %vm5638_vm0, %v2945_v39  ;;  %2661 = vmatpush1.bf16.msk.msra.mxu0 %vm5644_vm5, %v2659_v16  ;;  %v5648_v56 = vsel %vm4422_vm7, 4294967295, %v5647_v56  ;;  %v5650_v53 = vsel %vm4426_vm12, 4294967295, %v5649_v53  ;;  %vm4435_vm10 = vcmp.eq.f32.partialorder %v537_v37, %v1287_v46  ;;  %v1289_v37 = vcvt.s32.f32 %v1225_v44 }
 0x151   :  { %1180 = vmatprep.mubr.f32.mxu1 %v5485_v23  ;;  %v5652_v3 = vsel %vm4435_vm10, 4294967295, %v5651_v3  ;;  %vm5654_vm0 = vnez %v5469_v17  ;;  %vm5655_vm5 = vnez %v5465_v45  ;;  %vm5658_vm12 = vnez %v5463_v38 }
 0x152   :  { %v541_v46 = vpop.f32.mrb[60].mxu0  ;;  %vm5656_vm14 = vmpackc.low %vm5654_vm0, %vm5655_vm5  ;;  %v1226_v45 = vadd.s32 256, %v3599_v11  ;;  %v5662_v17 = vmov 0  ;;  %v5664_v44 = vmov 0  ;;  %vm5668_vm0 = vnez %v5491_v24 }
 0x153   :  { %v864_v16 = vpop.f32.mrb[62].mxu1  ;;  %v543_v51 = vpop.f32.mrb[61].mxu0  ;;  %vm5659_vm7 = vmpackc.low %vm5657_vm2, %vm5658_vm12  ;;  %vm4462_vm10 = vcmp.eq.f32.partialorder %v541_v46, %v1288_v19  ;;  %v5678_v24 = vmov 0 }
 0x154   :  { %v2665_v41 = vpack.c.bf16 %v864_v16, %v858_v35  ;;  %v866_v54 = vpop.f32.mrb[63].mxu1  ;;  %2505 = vmatmul.mubr.msk.f32.gmra.mrb[168].mxu1 %vm5653_vm15, %v2946_v15  ;;  %v2947_v15 = vld [vmem:[%s5209_s2 + $0x1f8] sm:$0xff]  ;;  %v1290_v46 = vcvt.s32.f32 %v1226_v45  ;;  %v5676_v45 = vmov 0 }
 0x155   :  { %v2662_v39 = vpack.c.bf16 %v866_v54, %v860_v57  ;;  %1186 = vmatprep.mubr.f32.mxu1 %v5485_v23  ;;  %v5660_v57 = vmov 0  ;;  %v5666_v54 = vmov 0 }
 0x156   :  { %v5661_v57 = vsel %vm4462_vm10, 4294967295, %v5660_v57  ;;  %v547_v40 = vpop.f32.mrb[62].mxu0  ;;  %vm5671_vm10 = vnez %v5489_v13 }
 0x157   :  { %v870_v35 = vpop.f32.mrb[64].mxu1  ;;  %2664 = vmatprep.subr.msk.bf16.mxu0 %vm5656_vm14, %v2662_v39  ;;  %vm4467_vm14 = vcmp.eq.f32.partialorder %v543_v51, %v1288_v19  ;;  %vm4472_vm5 = vcmp.eq.f32.partialorder %v547_v40, %v1289_v37  ;;  %v549_v38 = vpop.f32.mrb[63].mxu0 }
 0x158   :  { %v872_v16 = vpop.f32.mrb[65].mxu1  ;;  %2506 = vmatmul.mubr.msk.f32.gmra.mrb[170].mxu1 %vm5653_vm15, %v2947_v15  ;;  %2667 = vmatpush1.bf16.msk.msra.mxu0 %vm5659_vm7, %v2665_v41  ;;  %v5663_v17 = vsel %vm4467_vm14, 4294967295, %v5662_v17  ;;  %v5665_v44 = vsel %vm4472_vm5, 4294967295, %v5664_v44  ;;  %vm4481_vm12 = vcmp.eq.f32.partialorder %v549_v38, %v1289_v37  ;;  %vm5669_vm15 = vnez %v5487_v32 }
 0x159   :  { %2201 = vmatprep.mubr.f32.mxu1 %v5485_v23  ;;  %v5667_v54 = vsel %vm4481_vm12, 4294967295, %v5666_v54  ;;  %v1291_v23 = vcvt.s32.f32 %v1227_v47  ;;  %vm5670_vm7 = vmpackc.low %vm5668_vm0, %vm5669_vm15  ;;  %vm5672_vm5 = vnez %v5484_v6  ;;  %v1229_v6 = vadd.s32 280, %v3599_v11 }
 0x15a   :  { %v553_v15 = vpop.f32.mrb[64].mxu0  ;;  %vm5673_vm11 = vmpackc.low %vm5671_vm10, %vm5672_vm5  ;;  %v5680_v47 = vmov 0  ;;  %vm5683_vm15 = vnez %v5508_v34 }
 0x15b   :  { %v876_v41 = vpop.f32.mrb[66].mxu1  ;;  %v555_v40 = vpop.f32.mrb[65].mxu0  ;;  %vm4499_vm2 = vcmp.eq.f32.partialorder %v553_v15, %v1290_v46 }
 0x15c   :  { %v2671_v19 = vpack.c.bf16 %v876_v41, %v870_v35  ;;  %v878_v39 = vpop.f32.mrb[67].mxu1  ;;  %v5674_v35 = vmov 0  ;;  %vm4504_vm14 = vcmp.eq.f32.partialorder %v555_v40, %v1290_v46  ;;  %v1293_v40 = vcvt.s32.f32 %v1229_v6 }
 0x15d   :  { %v2668_v51 = vpack.c.bf16 %v878_v39, %v872_v16  ;;  %v5675_v35 = vsel %vm4499_vm2, 4294967295, %v5674_v35  ;;  %v1228_v16 = vadd.s32 272, %v3599_v11  ;;  %v5677_v45 = vsel %vm4504_vm14, 4294967295, %v5676_v45 }
 0x15e   :  { %v559_v32 = vpop.f32.mrb[66].mxu0  ;;  %vm5685_vm2 = vnez %v5510_v2  ;;  %v5694_v6 = vmov 0 }
 0x15f   :  { %v882_v55 = vpop.f32.mrb[68].mxu1  ;;  %2670 = vmatprep.subr.msk.bf16.mxu0 %vm5670_vm7, %v2668_v51  ;;  %vm4508_vm0 = vcmp.eq.f32.partialorder %v559_v32, %v1291_v23  ;;  %v561_v13 = vpop.f32.mrb[67].mxu0  ;;  %v1292_v39 = vcvt.s32.f32 %v1228_v16  ;;  %vm5682_vm7 = vnez %v5512_v52  ;;  %v5690_v16 = vmov 0 }
 0x160   :  { %v884_v37 = vpop.f32.mrb[69].mxu1  ;;  %2673 = vmatpush1.bf16.msk.msra.mxu0 %vm5673_vm11, %v2671_v19  ;;  %v5679_v24 = vsel %vm4508_vm0, 4294967295, %v5678_v24  ;;  %vm4517_vm10 = vcmp.eq.f32.partialorder %v561_v13, %v1291_v23  ;;  %vm5684_vm11 = vmpackc.low %vm5682_vm7, %vm5683_vm15  ;;  %vm5686_vm0 = vnez %v5506_v63  ;;  %v5692_v52 = vmov 0 }
 0x161   :  { %v5681_v47 = vsel %vm4517_vm10, 4294967295, %v5680_v47  ;;  %vm5687_vm12 = vmpackc.low %vm5685_vm2, %vm5686_vm0  ;;  %v1231_v63 = vadd.s32 296, %v3599_v11  ;;  %vm5697_vm15 = vnez %v5529_v7 }
 0x162   :  { %v565_v51 = vpop.f32.mrb[68].mxu0 }
 0x163   :  { %v888_v38 = vpop.f32.mrb[70].mxu1  ;;  %v567_v15 = vpop.f32.mrb[69].mxu0  ;;  %vm4535_vm5 = vcmp.eq.f32.partialorder %v565_v51, %v1292_v39 }
 0x164   :  { %v2677_v41 = vpack.c.bf16 %v888_v38, %v882_v55  ;;  %v890_v19 = vpop.f32.mrb[71].mxu1  ;;  %v5688_v55 = vmov 0  ;;  %vm4540_vm14 = vcmp.eq.f32.partialorder %v567_v15, %v1292_v39  ;;  %v1295_v15 = vcvt.s32.f32 %v1231_v63  ;;  %v1607_v63 = vld [vmem:[%s5210_s3 + $0xe8] sm:$0xff] }
 0x165   :  { %v2674_v46 = vpack.c.bf16 %v890_v19, %v884_v37  ;;  %v5689_v55 = vsel %vm4535_vm5, 4294967295, %v5688_v55  ;;  %v1230_v37 = vadd.s32 288, %v3599_v11  ;;  %v5691_v16 = vsel %vm4540_vm14, 4294967295, %v5690_v16 }
 0x166   :  { %v571_v34 = vpop.f32.mrb[70].mxu0  ;;  %vm5699_vm5 = vnez %v5531_v5 }
 0x167   :  { %v894_v32 = vpop.f32.mrb[72].mxu1  ;;  %2676 = vmatprep.subr.msk.bf16.mxu0 %vm5684_vm11, %v2674_v46  ;;  %vm4544_vm7 = vcmp.eq.f32.partialorder %v571_v34, %v1293_v40  ;;  %v573_v2 = vpop.f32.mrb[71].mxu0  ;;  %v1294_v19 = vcvt.s32.f32 %v1230_v37  ;;  %vm5696_vm11 = vnez %v5533_v42  ;;  %v5704_v37 = vmov 0 }
 0x168   :  { %v896_v23 = vpop.f32.mrb[73].mxu1  ;;  %2679 = vmatpush1.bf16.msk.msra.mxu0 %vm5687_vm12, %v2677_v41  ;;  %v5693_v52 = vsel %vm4544_vm7, 4294967295, %v5692_v52  ;;  %vm4553_vm2 = vcmp.eq.f32.partialorder %v573_v2, %v1293_v40  ;;  %vm5698_vm12 = vmpackc.low %vm5696_vm11, %vm5697_vm15  ;;  %vm5700_vm7 = vnez %v5527_v0  ;;  %v5706_v42 = vmov 0 }
 0x169   :  { %v5695_v6 = vsel %vm4553_vm2, 4294967295, %v5694_v6  ;;  %vm5701_vm10 = vmpackc.low %vm5699_vm5, %vm5700_vm7  ;;  %v1233_v0 = vadd.s32 312, %v3599_v11  ;;  %vm5711_vm15 = vnez %v5550_v8 }
 0x16a   :  { %v577_v46 = vpop.f32.mrb[72].mxu0 }
 0x16b   :  { %v900_v13 = vpop.f32.mrb[74].mxu1  ;;  %v579_v51 = vpop.f32.mrb[73].mxu0  ;;  %vm4571_vm0 = vcmp.eq.f32.partialorder %v577_v46, %v1294_v19 }
 0x16c   :  { %v2683_v38 = vpack.c.bf16 %v900_v13, %v894_v32  ;;  %v902_v41 = vpop.f32.mrb[75].mxu1  ;;  %v5702_v32 = vmov 0  ;;  %vm4576_vm14 = vcmp.eq.f32.partialorder %v579_v51, %v1294_v19  ;;  %v1297_v51 = vcvt.s32.f32 %v1233_v0  ;;  %v1615_v0 = vld [vmem:[%s5210_s3 + $0x128] sm:$0xff] }
 0x16d   :  { %v2680_v39 = vpack.c.bf16 %v902_v41, %v896_v23  ;;  %v5703_v32 = vsel %vm4571_vm0, 4294967295, %v5702_v32  ;;  %v1232_v23 = vadd.s32 304, %v3599_v11  ;;  %v5705_v37 = vsel %vm4576_vm14, 4294967295, %v5704_v37 }
 0x16e   :  { %v583_v7 = vpop.f32.mrb[74].mxu0  ;;  %vm5713_vm0 = vnez %v5552_v12 }
 0x16f   :  { %v906_v34 = vpop.f32.mrb[76].mxu1  ;;  %2682 = vmatprep.subr.msk.bf16.mxu0 %vm5698_vm12, %v2680_v39  ;;  %vm4580_vm11 = vcmp.eq.f32.partialorder %v583_v7, %v1295_v15  ;;  %v585_v5 = vpop.f32.mrb[75].mxu0  ;;  %v1296_v41 = vcvt.s32.f32 %v1232_v23  ;;  %vm5710_vm12 = vnez %v5554_v58  ;;  %v5718_v23 = vmov 0 }
 0x170   :  { %v908_v40 = vpop.f32.mrb[77].mxu1  ;;  %2685 = vmatpush1.bf16.msk.msra.mxu0 %vm5701_vm10, %v2683_v38  ;;  %v5707_v42 = vsel %vm4580_vm11, 4294967295, %v5706_v42  ;;  %vm4589_vm5 = vcmp.eq.f32.partialorder %v585_v5, %v1295_v15  ;;  %vm5712_vm10 = vmpackc.low %vm5710_vm12, %vm5711_vm15  ;;  %vm5714_vm11 = vnez %v5548_v20  ;;  %v5720_v58 = vmov 0 }
 0x171   :  { %vm5715_vm2 = vmpackc.low %vm5713_vm0, %vm5714_vm11  ;;  %v1235_v20 = vadd.s32 328, %v3599_v11  ;;  %vm5725_vm15 = vnez %v5574_v61 }
 0x172   :  { %v589_v39 = vpop.f32.mrb[76].mxu0 }
 0x173   :  { %v912_v2 = vpop.f32.mrb[78].mxu1  ;;  %v591_v46 = vpop.f32.mrb[77].mxu0  ;;  %vm4607_vm7 = vcmp.eq.f32.partialorder %v589_v39, %v1296_v41 }
 0x174   :  { %v2689_v13 = vpack.c.bf16 %v912_v2, %v906_v34  ;;  %v914_v38 = vpop.f32.mrb[79].mxu1  ;;  %v5716_v34 = vmov 0  ;;  %vm4612_vm14 = vcmp.eq.f32.partialorder %v591_v46, %v1296_v41  ;;  %v1299_v46 = vcvt.s32.f32 %v1235_v20 }
 0x175   :  { %v2686_v19 = vpack.c.bf16 %v914_v38, %v908_v40  ;;  %v5717_v34 = vsel %vm4607_vm7, 4294967295, %v5716_v34  ;;  %v1234_v40 = vadd.s32 320, %v3599_v11  ;;  %v5719_v23 = vsel %vm4612_vm14, 4294967295, %v5718_v23 }
 0x176   :  { %v595_v8 = vpop.f32.mrb[78].mxu0 }
 0x177   :  { %v918_v7 = vpop.f32.mrb[80].mxu1  ;;  %2688 = vmatprep.subr.msk.bf16.mxu0 %vm5712_vm10, %v2686_v19  ;;  %vm4616_vm12 = vcmp.eq.f32.partialorder %v595_v8, %v1297_v51  ;;  %v597_v12 = vpop.f32.mrb[79].mxu0  ;;  %v1298_v38 = vcvt.s32.f32 %v1234_v40  ;;  %vm5724_vm10 = vmpackc.low %vm4188_vm3, %vm4175_vm13 }
 0x178   :  { %v920_v15 = vpop.f32.mrb[81].mxu1  ;;  %2691 = vmatpush1.bf16.msk.msra.mxu0 %vm5715_vm2, %v2689_v13  ;;  %v5721_v58 = vsel %vm4616_vm12, 4294967295, %v5720_v58  ;;  %vm4625_vm0 = vcmp.eq.f32.partialorder %v597_v12, %v1297_v51  ;;  %vm5726_vm2 = vnez %v5570_v14  ;;  %vm5739_vm3 = vmpackc.low %vm4297_vm9, %vm4284_vm8  ;;  %vm5746_vm8 = vnez %v5620_v43  ;;  %v1623_v14 = vld [vmem:[%s5210_s3 + $0x168] sm:$0xff] }
 0x179   :  { %vm5727_vm7 = vmpackc.low %vm5725_vm15, %vm5726_vm2  ;;  %vm5747_vm9 = vnez %v5616_v9 }
 0x17a   :  { %v601_v19 = vpop.f32.mrb[80].mxu0  ;;  %vm5736_vm2 = vmpackc.low %vm4248_vm4, %vm4235_vm6  ;;  %vm5740_vm4 = vnez %v5607_v4  ;;  %vm5741_vm6 = vnez %v5603_v48 }
 0x17b   :  { %v924_v5 = vpop.f32.mrb[82].mxu1  ;;  %v603_v39 = vpop.f32.mrb[81].mxu0  ;;  %vm4643_vm11 = vcmp.eq.f32.partialorder %v601_v19, %v1298_v38 }
 0x17c   :  { %v2695_v2 = vpack.c.bf16 %v924_v5, %v918_v7  ;;  %v926_v13 = vpop.f32.mrb[83].mxu1  ;;  %vm4647_vm12 = vcmp.eq.f32.partialorder %v603_v39, %v1298_v38  ;;  %v1622_v7 = vld [vmem:[%s5210_s3 + $0x160] sm:$0xff] }
 0x17d   :  { %v2692_v41 = vpack.c.bf16 %v926_v13, %v920_v15 }
 0x17e   :  { %v607_v22 = vpop.f32.mrb[82].mxu0 }
 0x17f   :  { %v930_v8 = vpop.f32.mrb[84].mxu1  ;;  %2694 = vmatprep.subr.msk.bf16.mxu0 %vm5724_vm10, %v2692_v41  ;;  %vm4651_vm14 = vcmp.eq.f32.partialorder %v607_v22, %v1299_v46  ;;  %v609_v40 = vpop.f32.mrb[83].mxu0  ;;  %vm5737_vm10 = vnez %v5592_v60 }
 0x180   :  { %v932_v51 = vpop.f32.mrb[85].mxu1  ;;  %2697 = vmatpush1.bf16.msk.msra.mxu0 %vm5727_vm7, %v2695_v2  ;;  %vm4659_vm13 = vcmp.eq.f32.partialorder %v609_v40, %v1299_v46  ;;  %vm5738_vm15 = vmpackc.low %vm4239_vm1, %vm5737_vm10  ;;  %vm5743_vm1 = vnez %v5622_v1  ;;  %vm5744_vm10 = vnez %v5618_v27 }
 0x181   :  { %vm2759_vm7 = vmpackc.low %vm4659_vm13, %vm4647_vm12  ;;  %vm5791_vm12 = vnez %v5375_v30  ;;  %vm5793_vm13 = vnez %v5373_v26 }
 0x183   :  { %v936_v12 = vpop.f32.mrb[86].mxu1 }
 0x184   :  { %v2701_v61 = vpack.c.bf16 %v936_v12, %v930_v8  ;;  %v938_v20 = vpop.f32.mrb[87].mxu1 }
 0x185   :  { %v2698_v5 = vpack.c.bf16 %v938_v20, %v932_v51 }
 0x187   :  { %v942_v2 = vpop.f32.mrb[88].mxu1  ;;  %2700 = vmatprep.subr.msk.bf16.mxu0 %vm5736_vm2, %v2698_v5  ;;  %vm5742_vm2 = vmpackc.low %vm5740_vm4, %vm5741_vm6  ;;  %vm5749_vm4 = vnez %v5637_v62  ;;  %vm5750_vm6 = vnez %v5633_v59 }
 0x188   :  { %v944_v13 = vpop.f32.mrb[89].mxu1  ;;  %2703 = vmatpush1.bf16.msk.msra.mxu0 %vm5738_vm15, %v2701_v61  ;;  %vm5745_vm15 = vmpackc.low %vm5743_vm1, %vm5744_vm10  ;;  %vm5752_vm1 = vnez %v5635_v21  ;;  %vm5753_vm10 = vnez %v5631_v29 }
 0x18b   :  { %v948_v38 = vpop.f32.mrb[90].mxu1 }
 0x18c   :  { %v2707_v41 = vpack.c.bf16 %v948_v38, %v942_v2  ;;  %v950_v19 = vpop.f32.mrb[91].mxu1  ;;  %v1587_v2 = vld [vmem:[%s5210_s3 + $0x48] sm:$0xff] }
 0x18d   :  { %v2704_v39 = vpack.c.bf16 %v950_v19, %v944_v13 }
 0x18f   :  { %v954_v46 = vpop.f32.mrb[92].mxu1  ;;  %2706 = vmatprep.subr.msk.bf16.mxu0 %vm5739_vm3, %v2704_v39  ;;  %vm5748_vm3 = vmpackc.low %vm5746_vm8, %vm5747_vm9  ;;  %vm5755_vm8 = vnez %v5652_v3  ;;  %vm5756_vm9 = vnez %v5648_v56 }
 0x190   :  { %v956_v36 = vpop.f32.mrb[93].mxu1  ;;  %2709 = vmatpush1.bf16.msk.msra.mxu0 %vm5742_vm2, %v2707_v41  ;;  %vm5751_vm2 = vmpackc.low %vm5749_vm4, %vm5750_vm6  ;;  %vm5758_vm4 = vnez %v5650_v53  ;;  %vm5759_vm6 = vnez %v5646_v49  ;;  %v1578_v49 = vld [vmem:[%s5210_s3] sm:$0xff]  ;;  %v1583_v53 = vld [vmem:[%s5210_s3 + $0x28] sm:$0xff] }
 0x191   :  { %v1586_v41 = vld [vmem:[%s5210_s3 + $0x40] sm:$0xff] }
 0x193   :  { %v960_v33 = vpop.f32.mrb[94].mxu1 }
 0x194   :  { %v2713_v10 = vpack.c.bf16 %v960_v33, %v954_v46  ;;  %v962_v60 = vpop.f32.mrb[95].mxu1  ;;  %v1595_v46 = vld [vmem:[%s5210_s3 + $0x88] sm:$0xff] }
 0x195   :  { %v2710_v8 = vpack.c.bf16 %v962_v60, %v956_v36 }
 0x197   :  { %v966_v51 = vpop.f32.mrb[96].mxu1  ;;  %2712 = vmatprep.subr.msk.bf16.mxu0 %vm5745_vm15, %v2710_v8  ;;  %vm5754_vm15 = vmpackc.low %vm5752_vm1, %vm5753_vm10  ;;  %vm5761_vm1 = vnez %v5667_v54  ;;  %vm5762_vm10 = vnez %v5663_v17 }
 0x198   :  { %v968_v50 = vpop.f32.mrb[97].mxu1  ;;  %2715 = vmatpush1.bf16.msk.msra.mxu0 %vm5748_vm3, %v2713_v10  ;;  %vm5757_vm3 = vmpackc.low %vm5755_vm8, %vm5756_vm9  ;;  %vm5764_vm8 = vnez %v5665_v44  ;;  %vm5765_vm9 = vnez %v5661_v57  ;;  %v1582_v44 = vld [vmem:[%s5210_s3 + $0x20] sm:$0xff] }
 0x199   :  { %v1594_v10 = vld [vmem:[%s5210_s3 + $0x80] sm:$0xff] }
 0x19b   :  { %v972_v48 = vpop.f32.mrb[98].mxu1 }
 0x19c   :  { %v2719_v4 = vpack.c.bf16 %v972_v48, %v966_v51  ;;  %v974_v28 = vpop.f32.mrb[99].mxu1  ;;  %v1603_v51 = vld [vmem:[%s5210_s3 + $0xc8] sm:$0xff] }
 0x19d   :  { %v2716_v22 = vpack.c.bf16 %v974_v28, %v968_v50 }
 0x19f   :  { %v978_v40 = vpop.f32.mrb[100].mxu1  ;;  %2718 = vmatprep.subr.msk.bf16.mxu0 %vm5751_vm2, %v2716_v22  ;;  %vm5760_vm2 = vmpackc.low %vm5758_vm4, %vm5759_vm6  ;;  %vm5767_vm4 = vnez %v5681_v47  ;;  %vm5768_vm6 = vnez %v5677_v45  ;;  %v1591_v47 = vld [vmem:[%s5210_s3 + $0x68] sm:$0xff] }
 0x1a0   :  { %v980_v27 = vpop.f32.mrb[101].mxu1  ;;  %2721 = vmatpush1.bf16.msk.msra.mxu0 %vm5754_vm15, %v2719_v4  ;;  %vm5763_vm15 = vmpackc.low %vm5761_vm1, %vm5762_vm10  ;;  %vm5770_vm1 = vnez %v5679_v24  ;;  %vm5771_vm10 = vnez %v5675_v35  ;;  %v1590_v35 = vld [vmem:[%s5210_s3 + $0x60] sm:$0xff] }
 0x1a1   :  { %v1602_v4 = vld [vmem:[%s5210_s3 + $0xc0] sm:$0xff] }
 0x1a3   :  { %v984_v9 = vpop.f32.mrb[102].mxu1 }
 0x1a4   :  { %v2725_v43 = vpack.c.bf16 %v984_v9, %v978_v40  ;;  %v986_v1 = vpop.f32.mrb[103].mxu1  ;;  %v1611_v40 = vld [vmem:[%s5210_s3 + $0x108] sm:$0xff] }
 0x1a5   :  { %v2722_v12 = vpack.c.bf16 %v986_v1, %v980_v27 }
 0x1a7   :  { %v990_v61 = vpop.f32.mrb[104].mxu1  ;;  %2724 = vmatprep.subr.msk.bf16.mxu0 %vm5757_vm3, %v2722_v12  ;;  %vm5766_vm3 = vmpackc.low %vm5764_vm8, %vm5765_vm9  ;;  %vm5773_vm8 = vnez %v5695_v6  ;;  %vm5774_vm9 = vnez %v5691_v16  ;;  %v1599_v6 = vld [vmem:[%s5210_s3 + $0xa8] sm:$0xff] }
 0x1a8   :  { %v992_v59 = vpop.f32.mrb[105].mxu1  ;;  %2727 = vmatpush1.bf16.msk.msra.mxu0 %vm5760_vm2, %v2725_v43  ;;  %vm5769_vm2 = vmpackc.low %vm5767_vm4, %vm5768_vm6  ;;  %vm5776_vm4 = vnez %v5693_v52  ;;  %vm5777_vm6 = vnez %v5689_v55  ;;  %v1598_v55 = vld [vmem:[%s5210_s3 + $0xa0] sm:$0xff] }
 0x1a9   :  { %v1610_v43 = vld [vmem:[%s5210_s3 + $0x100] sm:$0xff] }
 0x1ab   :  { %v996_v29 = vpop.f32.mrb[106].mxu1 }
 0x1ac   :  { %v2731_v21 = vpack.c.bf16 %v996_v29, %v990_v61  ;;  %v998_v62 = vpop.f32.mrb[107].mxu1  ;;  %v1619_v61 = vld [vmem:[%s5210_s3 + $0x148] sm:$0xff] }
 0x1ad   :  { %v2728_v20 = vpack.c.bf16 %v998_v62, %v992_v59 }
 0x1af   :  { %v1002_v5 = vpop.f32.mrb[108].mxu1  ;;  %2730 = vmatprep.subr.msk.bf16.mxu0 %vm5763_vm15, %v2728_v20  ;;  %vm5772_vm15 = vmpackc.low %vm5770_vm1, %vm5771_vm10  ;;  %vm5779_vm1 = vnez %v5705_v37 }
 0x1b0   :  { %v1004_v56 = vpop.f32.mrb[109].mxu1  ;;  %2733 = vmatpush1.bf16.msk.msra.mxu0 %vm5766_vm3, %v2731_v21  ;;  %vm5775_vm3 = vmpackc.low %vm5773_vm8, %vm5774_vm9  ;;  %vm5782_vm8 = vnez %v5703_v32  ;;  %v1606_v32 = vld [vmem:[%s5210_s3 + $0xe0] sm:$0xff] }
 0x1b1   :  { %vm5780_vm10 = vmpackc.low %vm4589_vm5, %vm5779_vm1  ;;  %vm5784_vm5 = vnez %v5719_v23  ;;  %v1618_v21 = vld [vmem:[%s5210_s3 + $0x140] sm:$0xff] }
 0x1b3   :  { %v1008_v3 = vpop.f32.mrb[110].mxu1  ;;  %1735 = vmatmul.mubr.f32.vlgmr.msra.gmra.mrb[84].mxu0 %v1578_v49 }
 0x1b4   :  { %v2737_v17 = vpack.c.bf16 %v1008_v3, %v1002_v5  ;;  %v1010_v54 = vpop.f32.mrb[111].mxu1  ;;  %1740 = vmatprep.mubr.f32.mxu0 %v1583_v53  ;;  %v1627_v5 = vld [vmem:[%s5210_s3 + $0x188] sm:$0xff]  ;;  %v1626_v53 = vld [vmem:[%s5210_s3 + $0x180] sm:$0xff] }
 0x1b5   :  { %v2734_v57 = vpack.c.bf16 %v1010_v54, %v1004_v56  ;;  %v1635_v54 = vld [vmem:[%s5210_s3 + $0x1c8] sm:$0xff] }
 0x1b7   :  { %v1014_v13 = vpop.f32.mrb[112].mxu1  ;;  %2736 = vmatprep.subr.msk.bf16.mxu0 %vm5769_vm2, %v2734_v57  ;;  %1741 = vmatmul.mubr.f32.gmra.mrb[86].mxu0 %v1582_v44  ;;  %vm5778_vm2 = vmpackc.low %vm5776_vm4, %vm5777_vm6  ;;  %vm5786_vm4 = vnez %v5721_v58  ;;  %vm5787_vm6 = vnez %v5717_v34  ;;  %v1614_v34 = vld [vmem:[%s5210_s3 + $0x120] sm:$0xff] }
 0x1b8   :  { %v1016_v38 = vpop.f32.mrb[113].mxu1  ;;  %2739 = vmatpush1.bf16.msk.msra.mxu0 %vm5772_vm15, %v2737_v17  ;;  %1746 = vmatprep.mubr.f32.mxu0 %v1587_v2  ;;  %vm5781_vm15 = vnez %v5707_v42  ;;  %v5796_v57 = vld [vmem:[#allocation9_spill] sm:$0xff]  ;;  %v5798_v2 = vld [vmem:[#allocation8_spill] sm:$0xff] }
 0x1b9   :  { %vm5783_vm9 = vmpackc.low %vm5781_vm15, %vm5782_vm8  ;;  %vm5799_vm15 = vnez %v5798_v2  ;;  %v1581_v2 = vld [vmem:[%s5210_s3 + $0x18] sm:$0xff] }
 0x1bb   :  { %v1020_v45 = vpop.f32.mrb[114].mxu1  ;;  %1747 = vmatmul.mubr.f32.gmra.mrb[88].mxu0 %v1586_v41  ;;  %v5803_v41 = vld [vmem:[#allocation6_spill] sm:$0xff] }
 0x1bc   :  { %v2743_v19 = vpack.c.bf16 %v1020_v45, %v1014_v13  ;;  %v1022_v39 = vpop.f32.mrb[115].mxu1  ;;  %1752 = vmatprep.mubr.f32.mxu0 %v1591_v47  ;;  %v1634_v47 = vld [vmem:[%s5210_s3 + $0x1c0] sm:$0xff]  ;;  %v1639_v45 = vld [vmem:[%s5210_s3 + $0x1e8] sm:$0xff] }
 0x1bd   :  { %v2740_v24 = vpack.c.bf16 %v1022_v39, %v1016_v38  ;;  %v5801_v38 = vld [vmem:[#allocation7_spill] sm:$0xff] }
 0x1bf   :  { %v1026_v36 = vpop.f32.mrb[116].mxu1  ;;  %2742 = vmatprep.subr.msk.bf16.mxu0 %vm5775_vm3, %v2740_v24  ;;  %1753 = vmatmul.mubr.f32.gmra.mrb[90].mxu0 %v1590_v35  ;;  %vm5785_vm3 = vmpackc.low %vm4625_vm0, %vm5784_vm5  ;;  %vm5804_vm5 = vnez %v5803_v41  ;;  %v1638_v24 = vld [vmem:[%s5210_s3 + $0x1e0] sm:$0xff]  ;;  %v2077_v41 = vld [vmem:[%s5211_s4 + $0x8] sm:$0xff] }
 0x1c0   :  { %v1028_v33 = vpop.f32.mrb[117].mxu1  ;;  %2745 = vmatpush1.bf16.msk.msra.mxu0 %vm5778_vm2, %v2743_v19  ;;  %1758 = vmatprep.mubr.f32.mxu0 %v1595_v46  ;;  %vm5788_vm2 = vmpackc.low %vm5786_vm4, %vm5787_vm6 }
 0x1c1   :  { %vm5789_vm0 = vmpackc.low %vm4651_vm14, %vm4643_vm11  ;;  %vm5790_vm14 = vnez %v5377_v31  ;;  %v1631_v31 = vld [vmem:[%s5210_s3 + $0x1a8] sm:$0xff] }
 0x1c2   :  { %vm5792_vm11 = vmpackc.low %vm5790_vm14, %vm5791_vm12 }
 0x1c3   :  { %v1032_v16 = vpop.f32.mrb[118].mxu1  ;;  %1759 = vmatmul.mubr.f32.gmra.mrb[92].mxu0 %v1594_v10  ;;  %v5806_v10 = vld [vmem:[#allocation13_spill] sm:$0xff] }
 0x1c4   :  { %v2749_v60 = vpack.c.bf16 %v1032_v16, %v1026_v36  ;;  %v1034_v8 = vpop.f32.mrb[119].mxu1  ;;  %1764 = vmatprep.mubr.f32.mxu0 %v1599_v6  ;;  %v1643_v36 = vld [vmem:[%s5210_s3 + $0x208] sm:$0xff]  ;;  %vm5807_vm4 = vnez %v5806_v10  ;;  %v5808_v6 = vld [vmem:[#allocation12_spill] sm:$0xff] }
 0x1c5   :  { %v2746_v52 = vpack.c.bf16 %v1034_v8, %v1028_v33  ;;  %vm5809_vm6 = vnez %v5808_v6  ;;  %v5813_v8 = vld [vmem:[#allocation10_spill] sm:$0xff]  ;;  %v5851_v10 = vld [vmem:[#allocation27_spill] sm:$0xff] }
 0x1c6   :  { %vm5814_vm14 = vnez %v5813_v8  ;;  %v5853_v6 = vld [vmem:[#allocation26_spill] sm:$0xff] }
 0x1c7   :  { %v1038_v50 = vpop.f32.mrb[120].mxu1  ;;  %2748 = vmatprep.subr.msk.bf16.mxu0 %vm5780_vm10, %v2746_v52  ;;  %1765 = vmatmul.mubr.f32.gmra.mrb[94].mxu0 %v1598_v55  ;;  %vm5797_vm10 = vnez %v5796_v57  ;;  %v1642_v55 = vld [vmem:[%s5210_s3 + $0x200] sm:$0xff]  ;;  %v1647_v52 = vld [vmem:[%s5210_s3 + $0x228] sm:$0xff]  ;;  %v2078_v57 = vld [vmem:[%s5211_s4 + $0x10] sm:$0xff] }
 0x1c8   :  { %v1040_v48 = vpop.f32.mrb[121].mxu1  ;;  %2751 = vmatpush1.bf16.msk.msra.mxu0 %vm5783_vm9, %v2749_v60  ;;  %1770 = vmatprep.mubr.f32.mxu0 %v1603_v51  ;;  %vm5800_vm8 = vmpackc.low %vm5797_vm10, %vm5799_vm15  ;;  %vm5802_vm9 = vnez %v5801_v38  ;;  %v5811_v60 = vld [vmem:[#allocation11_spill] sm:$0xff] }
 0x1cb   :  { %v1044_v37 = vpop.f32.mrb[122].mxu1  ;;  %1771 = vmatmul.mubr.f32.gmra.mrb[96].mxu0 %v1602_v4  ;;  %v1646_v4 = vld [vmem:[%s5210_s3 + $0x220] sm:$0xff] }
 0x1cc   :  { %v2755_v28 = vpack.c.bf16 %v1044_v37, %v1038_v50  ;;  %v1046_v22 = vpop.f32.mrb[123].mxu1  ;;  %1776 = vmatprep.mubr.f32.mxu0 %v1607_v63  ;;  %v1651_v37 = vld [vmem:[%s5210_s3 + $0x248] sm:$0xff] }
 0x1cd   :  { %v2752_v42 = vpack.c.bf16 %v1046_v22, %v1040_v48  ;;  %v5816_v22 = vld [vmem:[#allocation17_spill] sm:$0xff] }
 0x1cf   :  { %v1050_v27 = vpop.f32.mrb[124].mxu1  ;;  %2754 = vmatprep.subr.msk.bf16.mxu0 %vm5785_vm3, %v2752_v42  ;;  %1777 = vmatmul.mubr.f32.gmra.mrb[98].mxu0 %v1606_v32  ;;  %vm5805_vm3 = vmpackc.low %vm5802_vm9, %vm5804_vm5  ;;  %v5818_v32 = vld [vmem:[#allocation16_spill] sm:$0xff] }
 0x1d0   :  { %v1052_v9 = vpop.f32.mrb[125].mxu1  ;;  %2757 = vmatpush1.bf16.msk.msra.mxu0 %vm5788_vm2, %v2755_v28  ;;  %1782 = vmatprep.mubr.f32.mxu0 %v1611_v40  ;;  %vm5810_vm2 = vmpackc.low %vm5807_vm4, %vm5809_vm6  ;;  %v5821_v40 = vld [vmem:[#allocation15_spill] sm:$0xff] }
 0x1d3   :  { %v1056_v23 = vpop.f32.mrb[126].mxu1  ;;  %1783 = vmatmul.mubr.f32.gmra.mrb[100].mxu0 %v1610_v43  ;;  %v1655_v43 = vld [vmem:[%s5210_s3 + $0x268] sm:$0xff] }
 0x1d4   :  { %v2761_v1 = vpack.c.bf16 %v1056_v23, %v1050_v27  ;;  %v1058_v12 = vpop.f32.mrb[127].mxu1  ;;  %1788 = vmatprep.mubr.f32.mxu0 %v1615_v0  ;;  %v5823_v27 = vld [vmem:[#allocation14_spill] sm:$0xff] }
 0x1d5   :  { %v2758_v58 = vpack.c.bf16 %v1058_v12, %v1052_v9  ;;  %vm5824_vm10 = vnez %v5823_v27  ;;  %v1650_v9 = vld [vmem:[%s5210_s3 + $0x240] sm:$0xff]  ;;  %v5868_v27 = vld [vmem:[#allocation36_spill] sm:$0xff] }
 0x1d6   :  { %v1654_v12 = vld [vmem:[%s5210_s3 + $0x260] sm:$0xff] }
 0x1d7   :  { %v1062_v59 = vpop.f32.mrb[128].mxu1  ;;  %2760 = vmatprep.subr.msk.bf16.mxu0 %vm2759_vm7, %v2758_v58  ;;  %1789 = vmatmul.mubr.f32.gmra.mrb[102].mxu0 %v1614_v34  ;;  %vm5794_vm7 = vnez %v5371_v25  ;;  %v1630_v25 = vld [vmem:[%s5210_s3 + $0x1a0] sm:$0xff]  ;;  %v1659_v58 = vld [vmem:[%s5210_s3 + $0x288] sm:$0xff] }
 0x1d8   :  { %v1064_v29 = vpop.f32.mrb[129].mxu1  ;;  %2763 = vmatpush1.bf16.msk.msra.mxu0 %vm5789_vm0, %v2761_v1  ;;  %1794 = vmatprep.mubr.f32.mxu0 %v1619_v61  ;;  %vm5795_vm1 = vmpackc.low %vm5793_vm13, %vm5794_vm7  ;;  %vm5812_vm0 = vnez %v5811_v60  ;;  %vm5819_vm13 = vnez %v5818_v32 }
 0x1d9   :  { %vm5815_vm12 = vmpackc.low %vm5812_vm0, %vm5814_vm14 }
 0x1db   :  { %v1068_v15 = vpop.f32.mrb[130].mxu1  ;;  %1795 = vmatmul.mubr.f32.gmra.mrb[104].mxu0 %v1618_v21 }
 0x1dc   :  { %v2767_v62 = vpack.c.bf16 %v1068_v15, %v1062_v59  ;;  %v1070_v20 = vpop.f32.mrb[131].mxu1  ;;  %1800 = vmatprep.mubr.f32.mxu0 %v1623_v14  ;;  %v5826_v59 = vld [vmem:[#allocation21_spill] sm:$0xff]  ;;  %v5831_v14 = vld [vmem:[#allocation19_spill] sm:$0xff]  ;;  %v5833_v15 = vld [vmem:[#allocation18_spill] sm:$0xff] }
 0x1dd   :  { %v2764_v18 = vpack.c.bf16 %v1070_v20, %v1064_v29  ;;  %v5828_v29 = vld [vmem:[#allocation20_spill] sm:$0xff]  ;;  %vm5834_vm4 = vnez %v5833_v15  ;;  %v1663_v20 = vld [vmem:[%s5210_s3 + $0x2a8] sm:$0xff] }
 0x1de   :  { %vm5829_vm9 = vnez %v5828_v29 }
 0x1df   :  { %v1074_v56 = vpop.f32.mrb[132].mxu1  ;;  %2766 = vmatprep.subr.msk.bf16.mxu0 %vm5792_vm11, %v2764_v18  ;;  %1801 = vmatmul.mubr.f32.gmra.mrb[106].mxu0 %v1622_v7  ;;  %vm5817_vm11 = vnez %v5816_v22 }
 0x1e0   :  { %v1076_v49 = vpop.f32.mrb[133].mxu1  ;;  %2769 = vmatpush1.bf16.msk.msra.mxu0 %vm5795_vm1, %v2767_v62  ;;  %1806 = vmatprep.mubr.f32.mxu0 %v1627_v5  ;;  %vm5820_vm7 = vmpackc.low %vm5817_vm11, %vm5819_vm13  ;;  %vm5822_vm1 = vnez %v5821_v40  ;;  %v1658_v62 = vld [vmem:[%s5210_s3 + $0x280] sm:$0xff] }
 0x1e1   :  { %vm5825_vm15 = vmpackc.low %vm5822_vm1, %vm5824_vm10  ;;  %v5866_v40 = vld [vmem:[#allocation37_spill] sm:$0xff] }
 0x1e3   :  { %v1080_v30 = vpop.f32.mrb[134].mxu1  ;;  %1807 = vmatmul.mubr.f32.gmra.mrb[108].mxu0 %v1626_v53  ;;  %v1667_v53 = vld [vmem:[%s5210_s3 + $0x2c8] sm:$0x1] }
 0x1e4   :  { %v2773_v3 = vpack.c.bf16 %v1080_v30, %v1074_v56  ;;  %v1082_v17 = vpop.f32.mrb[135].mxu1  ;;  %1812 = vmatprep.mubr.f32.mxu0 %v1631_v31  ;;  %v1662_v56 = vld [vmem:[%s5210_s3 + $0x2a0] sm:$0xff] }
 0x1e5   :  { %v2770_v26 = vpack.c.bf16 %v1082_v17, %v1076_v49  ;;  %v5836_v30 = vld [vmem:[#allocation25_spill] sm:$0xff] }
 0x1e6   :  { %v2076_v17 = vld [vmem:[%s5211_s4] sm:$0xff] }
 0x1e7   :  { %v1086_v44 = vpop.f32.mrb[136].mxu1  ;;  %2772 = vmatprep.subr.msk.bf16.mxu0 %vm5800_vm8, %v2770_v26  ;;  %1813 = vmatmul.mubr.f32.gmra.mrb[110].mxu0 %v1630_v25  ;;  %vm5827_vm8 = vnez %v5826_v59  ;;  %v5841_v26 = vld [vmem:[#allocation23_spill] sm:$0xff]  ;;  %v5878_v59 = vld [vmem:[#allocation40_spill] sm:$0xff] }
 0x1e8   :  { %v1088_v13 = vpop.f32.mrb[137].mxu1  ;;  %2775 = vmatpush1.bf16.msk.msra.mxu0 %vm5805_vm3, %v2773_v3  ;;  %1818 = vmatprep.mubr.f32.mxu0 %v1635_v54  ;;  %vm5830_vm5 = vmpackc.low %vm5827_vm8, %vm5829_vm9  ;;  %vm5832_vm3 = vnez %v5831_v14  ;;  %v5838_v3 = vld [vmem:[#allocation24_spill] sm:$0xff]  ;;  %v5843_v54 = vld [vmem:[#allocation22_spill] sm:$0xff]  ;;  %vm5854_vm8 = vnez %v5853_v6 }
 0x1e9   :  { %vm5835_vm6 = vmpackc.low %vm5832_vm3, %vm5834_vm4  ;;  %vm5839_vm0 = vnez %v5838_v3  ;;  %vm5844_vm11 = vnez %v5843_v54  ;;  %v5883_v14 = vld [vmem:[#allocation38_spill] sm:$0xff]  ;;  %v1589_v3 = vld [vmem:[%s5210_s3 + $0x58] sm:$0xff] }
 0x1ea   :  { %v1597_v54 = vld [vmem:[%s5210_s3 + $0x98] sm:$0xff] }
 0x1eb   :  { %v1092_v19 = vpop.f32.mrb[138].mxu1  ;;  %1819 = vmatmul.mubr.f32.gmra.mrb[112].mxu0 %v1634_v47  ;;  %v2079_v47 = vld [vmem:[%s5211_s4 + $0x18] sm:$0xff] }
 0x1ec   :  { %v2779_v39 = vpack.c.bf16 %v1092_v19, %v1086_v44  ;;  %v1094_v35 = vpop.f32.mrb[139].mxu1  ;;  %1824 = vmatprep.mubr.f32.mxu0 %v1639_v45  ;;  %v1666_v44 = vld [vmem:[%s5210_s3 + $0x2c0] sm:$0x1]  ;;  %v1629_v6 = vld [vmem:[%s5210_s3 + $0x198] sm:$0xff] }
 0x1ed   :  { %v2776_v46 = vpack.c.bf16 %v1094_v35, %v1088_v13  ;;  %v2973_v13 = vmov 0  }
 0x1ee   :  { %2932 = vset.pattern.permute.xlu0 %v2973_v13  ;;  %2933 = vset.pattern.permute.xlu1 %v2973_v13  ;;  %v1605_v13 = vld [vmem:[%s5210_s3 + $0xd8] sm:$0xff] }
 0x1ef   :  { %v1098_v33 = vpop.f32.mrb[140].mxu1  ;;  %2778 = vmatprep.subr.msk.bf16.mxu0 %vm5810_vm2, %v2776_v46  ;;  %1825 = vmatmul.mubr.f32.gmra.mrb[114].mxu0 %v1638_v24  ;;  %vm5837_vm2 = vnez %v5836_v30  ;;  %v5846_v24 = vld [vmem:[#allocation29_spill] sm:$0xff]  ;;  %v5848_v46 = vld [vmem:[#allocation28_spill] sm:$0xff] }
 0x1f0   :  { %v1100_v16 = vpop.f32.mrb[141].mxu1  ;;  %2781 = vmatpush1.bf16.msk.msra.mxu0 %vm5815_vm12, %v2779_v39  ;;  %1830 = vmatprep.mubr.f32.mxu0 %v1643_v36  ;;  %vm5840_vm14 = vmpackc.low %vm5837_vm2, %vm5839_vm0  ;;  %vm5842_vm12 = vnez %v5841_v26  ;;  %vm5849_vm1 = vnez %v5848_v46  ;;  %v2118_v36 = vld [vmem:[%s5213_s6] sm:$0xff]  ;;  %v1584_v30 = vld [vmem:[%s5210_s3 + $0x30] sm:$0xff] }
 0x1f1   :  { %vm5845_vm13 = vmpackc.low %vm5842_vm12, %vm5844_vm11  ;;  %2082 = vperm.xlu0 %2932, %v2076_v17   ;;  %2092 = vperm.xlu1 %2933, %v2078_v57   ;;  %vm5869_vm12 = vnez %v5868_v27  ;;  %v1588_v17 = vld [vmem:[%s5210_s3 + $0x50] sm:$0xff]  ;;  %v1601_v57 = vld [vmem:[%s5210_s3 + $0xb8] sm:$0xff] }
 0x1f2   :  { %v1592_v26 = vld [vmem:[%s5210_s3 + $0x70] sm:$0xff]  ;;  %v2119_v46 = vld [vmem:[%s5213_s6 + $0x8] sm:$0xff] }
 0x1f3   :  { %v1104_v51 = vpop.f32.mrb[142].mxu1  ;;  %1831 = vmatmul.mubr.f32.gmra.mrb[116].mxu0 %v1642_v55  ;;  %v1660_v27 = vld [vmem:[%s5210_s3 + $0x290] sm:$0xff] }
 0x1f4   :  { %v2785_v50 = vpack.c.bf16 %v1104_v51, %v1098_v33  ;;  %v1106_v48 = vpop.f32.mrb[143].mxu1  ;;  %1836 = vmatprep.mubr.f32.mxu0 %v1647_v52  ;;  %v5856_v51 = vld [vmem:[#allocation33_spill] sm:$0xff] }
 0x1f5   :  { %v2782_v63 = vpack.c.bf16 %v1106_v48, %v1100_v16  ;;  %2087 = vperm.xlu0 %2932, %v2077_v41   ;;  %2097 = vperm.xlu1 %2933, %v2079_v47   ;;  %v1609_v41 = vld [vmem:[%s5210_s3 + $0xf8] sm:$0xff]  ;;  %v1608_v47 = vld [vmem:[%s5210_s3 + $0xf0] sm:$0xff] }
 0x1f7   :  { %v1110_v28 = vpop.f32.mrb[144].mxu1  ;;  %2784 = vmatprep.subr.msk.bf16.mxu0 %vm5820_vm7, %v2782_v63  ;;  %1837 = vmatmul.mubr.f32.gmra.mrb[118].mxu0 %v1646_v4  ;;  %vm5847_vm7 = vnez %v5846_v24  ;;  %v5861_v4 = vld [vmem:[#allocation31_spill] sm:$0xff]  ;;  %v5863_v63 = vld [vmem:[#allocation30_spill] sm:$0xff]  ;;  %v1621_v24 = vld [vmem:[%s5210_s3 + $0x158] sm:$0xff] }
 0x1f8   :  { %v1112_v42 = vpop.f32.mrb[145].mxu1  ;;  %2787 = vmatpush1.bf16.msk.msra.mxu0 %vm5825_vm15, %v2785_v50  ;;  %1842 = vmatprep.mubr.f32.mxu0 %v1651_v37  ;;  %vm5850_vm10 = vmpackc.low %vm5847_vm7, %vm5849_vm1  ;;  %vm5852_vm15 = vnez %v5851_v10  ;;  %v5858_v50 = vld [vmem:[#allocation32_spill] sm:$0xff]  ;;  %vm5864_vm2 = vnez %v5863_v63 }
 0x1f9   :  { %vm5855_vm9 = vmpackc.low %vm5852_vm15, %vm5854_vm8  ;;  %2122 = vperm.xlu0 %2932, %v2118_v36   ;;  %vm5859_vm3 = vnez %v5858_v50  ;;  %vm5879_vm15 = vnez %v5878_v59  ;;  %v1620_v36 = vld [vmem:[%s5210_s3 + $0x150] sm:$0xff]  ;;  %2127 = vperm.xlu1 %2933, %v2119_v46   ;;  %v1649_v63 = vld [vmem:[%s5210_s3 + $0x238] sm:$0xff] }
 0x1fa   :  { %v1624_v10 = vld [vmem:[%s5210_s3 + $0x170] sm:$0xff] }
 0x1fb   :  { %v1116_v0 = vpop.f32.mrb[146].mxu1  ;;  %1843 = vmatmul.mubr.f32.gmra.mrb[120].mxu0 %v1650_v9  ;;  %v1640_v50 = vld [vmem:[%s5210_s3 + $0x1f0] sm:$0xff] }
 0x1fc   :  { %v2791_v23 = vpack.c.bf16 %v1116_v0, %v1110_v28  ;;  %v1118_v1 = vpop.f32.mrb[147].mxu1  ;;  %1848 = vmatprep.mubr.f32.mxu0 %v1655_v43  ;;  %v5871_v43 = vld [vmem:[#allocation35_spill] sm:$0xff]  ;;  %v5873_v0 = vld [vmem:[#allocation34_spill] sm:$0xff] }
 0x1fd   :  { %v2788_v34 = vpack.c.bf16 %v1118_v1, %v1112_v42  ;;  %vm5874_vm7 = vnez %v5873_v0 }
 0x1ff   :  { %v1122_v61 = vpop.f32.mrb[148].mxu1  ;;  %2790 = vmatprep.subr.msk.bf16.mxu0 %vm5830_vm5, %v2788_v34  ;;  %1849 = vmatmul.mubr.f32.gmra.mrb[122].mxu0 %v1654_v12  ;;  %vm5857_vm5 = vnez %v5856_v51  ;;  %v1641_v51 = vld [vmem:[%s5210_s3 + $0x1f8] sm:$0xff] }
 0x200   :  { %v1124_v21 = vpop.f32.mrb[149].mxu1  ;;  %2793 = vmatpush1.bf16.msk.msra.mxu0 %vm5835_vm6, %v2791_v23  ;;  %1854 = vmatprep.mubr.f32.mxu0 %v1659_v58  ;;  %vm5860_vm4 = vmpackc.low %vm5857_vm5, %vm5859_vm3  ;;  %vm5862_vm6 = vnez %v5861_v4  ;;  %vm5884_vm5 = vnez %v5883_v14  ;;  %v1644_v4 = vld [vmem:[%s5210_s3 + $0x210] sm:$0xff] }
 0x201   :  { %vm5865_vm0 = vmpackc.low %vm5862_vm6, %vm5864_vm2 }
 0x203   :  { %v1128_v7 = vpop.f32.mrb[150].mxu1  ;;  %1855 = vmatmul.mubr.f32.gmra.mrb[124].mxu0 %v1658_v62 }
 0x204   :  { %v2797_v18 = vpack.c.bf16 %v1128_v7, %v1122_v61  ;;  %v1130_v5 = vpop.f32.mrb[151].mxu1  ;;  %1860 = vmatprep.mubr.f32.mxu0 %v1663_v20  ;;  %v5876_v61 = vld [vmem:[#allocation41_spill] sm:$0xff] }
 0x205   :  { %v2794_v49 = vpack.c.bf16 %v1130_v5, %v1124_v21  ;;  %v5881_v21 = vld [vmem:[#allocation39_spill] sm:$0xff]  ;;  %v5888_v5 = vld [vmem:[#allocation44_spill] sm:$0xff] }
 0x206   :  { %vm5889_vm6 = vnez %v5888_v5 }
 0x207   :  { %v1134_v31 = vpop.f32.mrb[152].mxu1  ;;  %2796 = vmatprep.subr.msk.bf16.mxu0 %vm5840_vm14, %v2794_v49  ;;  %1861 = vmatmul.mubr.f32.gmra.mrb[126].mxu0 %v1662_v56  ;;  %vm5867_vm14 = vnez %v5866_v40  ;;  %v5891_v56 = vld [vmem:[#allocation43_spill] sm:$0xff]  ;;  %v5893_v49 = vld [vmem:[#allocation42_spill] sm:$0xff]  ;;  %v1661_v40 = vld [vmem:[%s5210_s3 + $0x298] sm:$0xff] }
 0x208   :  { %v1136_v25 = vpop.f32.mrb[153].mxu1  ;;  %2799 = vmatpush1.bf16.msk.msra.mxu0 %vm5845_vm13, %v2797_v18  ;;  %1866 = vmatprep.mubr.f32.mxu0 %v1667_v53  ;;  %vm5870_vm11 = vmpackc.low %vm5867_vm14, %vm5869_vm12  ;;  %vm5872_vm13 = vnez %v5871_v43  ;;  %v5886_v18 = vld [vmem:[#allocation45_spill] sm:$0xff]  ;;  %vm5894_vm14 = vnez %v5893_v49  ;;  %v1580_v53 = vld [vmem:[%s5210_s3 + $0x10] sm:$0xff] }
 0x209   :  { %vm5875_vm1 = vmpackc.low %vm5872_vm13, %vm5874_vm7  ;;  %v1664_v43 = vld [vmem:[%s5210_s3 + $0x2b0] sm:$0xff] }
 0x20b   :  { %v1140_v38 = vpop.f32.mrb[154].mxu1  ;;  %1867 = vmatmul.mubr.f32.gmra.mrb[128].mxu0 %v1666_v44  ;;  %v1596_v44 = vld [vmem:[%s5210_s3 + $0x90] sm:$0xff] }
 0x20c   :  { %v2803_v45 = vpack.c.bf16 %v1140_v38, %v1134_v31  ;;  %v1142_v19 = vpop.f32.mrb[155].mxu1  ;;  %1937 = vmatprep.mubr.f32.mxu0 %v1581_v2  ;;  %v1585_v31 = vld [vmem:[%s5210_s3 + $0x38] sm:$0xff]  ;;  %v1600_v2 = vld [vmem:[%s5210_s3 + $0xb0] sm:$0xff] }
 0x20d   :  { %v2800_v39 = vpack.c.bf16 %v1142_v19, %v1136_v25  ;;  %v1593_v25 = vld [vmem:[%s5210_s3 + $0x78] sm:$0xff]  ;;  %v1604_v38 = vld [vmem:[%s5210_s3 + $0xd0] sm:$0xff] }
 0x20e   :  { %v1612_v19 = vld [vmem:[%s5210_s3 + $0x110] sm:$0xff] }
 0x20f   :  { %v1146_v35 = vpop.f32.mrb[156].mxu1  ;;  %2802 = vmatprep.subr.msk.bf16.mxu0 %vm5850_vm10, %v2800_v39  ;;  %vm5877_vm10 = vnez %v5876_v61  ;;  %v1617_v39 = vld [vmem:[%s5210_s3 + $0x138] sm:$0xff] }
 0x210   :  { %v1148_v33 = vpop.f32.mrb[157].mxu1  ;;  %2805 = vmatpush1.bf16.msk.msra.mxu0 %vm5855_vm9, %v2803_v45  ;;  %vm5880_vm8 = vmpackc.low %vm5877_vm10, %vm5879_vm15  ;;  %vm5882_vm9 = vnez %v5881_v21  ;;  %v1613_v45 = vld [vmem:[%s5210_s3 + $0x118] sm:$0xff] }
 0x211   :  { %vm5885_vm3 = vmpackc.low %vm5882_vm9, %vm5884_vm5 }
 0x213   :  { %v1152_v16 = vpop.f32.mrb[158].mxu1 }
 0x214   :  { %v2809_v60 = vpack.c.bf16 %v1152_v16, %v1146_v35  ;;  %v1154_v8 = vpop.f32.mrb[159].mxu1  ;;  %v1616_v35 = vld [vmem:[%s5210_s3 + $0x130] sm:$0xff] }
 0x215   :  { %v2806_v55 = vpack.c.bf16 %v1154_v8, %v1148_v33  ;;  %v1625_v33 = vld [vmem:[%s5210_s3 + $0x178] sm:$0xff]  ;;  %v1628_v16 = vld [vmem:[%s5210_s3 + $0x190] sm:$0xff] }
 0x216   :  { %v1632_v8 = vld [vmem:[%s5210_s3 + $0x1b0] sm:$0xff] }
 0x217   :  { %v1158_v52 = vpop.f32.mrb[160].mxu1  ;;  %2808 = vmatprep.subr.msk.bf16.mxu0 %vm5860_vm4, %v2806_v55  ;;  %vm5887_vm4 = vnez %v5886_v18  ;;  %v1637_v55 = vld [vmem:[%s5210_s3 + $0x1d8] sm:$0xff] }
 0x218   :  { %v1160_v48 = vpop.f32.mrb[161].mxu1  ;;  %2811 = vmatpush1.bf16.msk.msra.mxu0 %vm5865_vm0, %v2809_v60  ;;  %vm5890_vm2 = vmpackc.low %vm5887_vm4, %vm5889_vm6  ;;  %vm5892_vm0 = vnez %v5891_v56  ;;  %v1633_v60 = vld [vmem:[%s5210_s3 + $0x1b8] sm:$0xff] }
 0x219   :  { %vm5895_vm12 = vmpackc.low %vm5892_vm0, %vm5894_vm14 }
 0x21b   :  { %v1164_v37 = vpop.f32.mrb[162].mxu1 }
 0x21c   :  { %v2815_v28 = vpack.c.bf16 %v1164_v37, %v1158_v52  ;;  %v1166_v22 = vpop.f32.mrb[163].mxu1  ;;  %v1636_v52 = vld [vmem:[%s5210_s3 + $0x1d0] sm:$0xff] }
 0x21d   :  { %v2812_v32 = vpack.c.bf16 %v1166_v22, %v1160_v48  ;;  %v1645_v48 = vld [vmem:[%s5210_s3 + $0x218] sm:$0xff]  ;;  %v1648_v37 = vld [vmem:[%s5210_s3 + $0x230] sm:$0xff] }
 0x21e   :  { %v1652_v22 = vld [vmem:[%s5210_s3 + $0x250] sm:$0xff] }
 0x21f   :  { %v1170_v42 = vpop.f32.mrb[164].mxu1  ;;  %2814 = vmatprep.subr.msk.bf16.mxu0 %vm5870_vm11, %v2812_v32  ;;  %v1657_v32 = vld [vmem:[%s5210_s3 + $0x278] sm:$0xff]  ;;  %vm2130_vm11 = vcmask 261120  }
 0x220   :  { %v1172_v9 = vpop.f32.mrb[165].mxu1  ;;  %2817 = vmatpush1.bf16.msk.msra.mxu0 %vm5875_vm1, %v2815_v28  ;;  %v1653_v28 = vld [vmem:[%s5210_s3 + $0x258] sm:$0xff] }
 0x223   :  { %v1176_v23 = vpop.f32.mrb[166].mxu1 }
 0x224   :  { %v2821_v1 = vpack.c.bf16 %v1176_v23, %v1170_v42  ;;  %v1178_v12 = vpop.f32.mrb[167].mxu1  ;;  %v1656_v42 = vld [vmem:[%s5210_s3 + $0x270] sm:$0xff] }
 0x225   :  { %v2818_v34 = vpack.c.bf16 %v1178_v12, %v1172_v9  ;;  %v1665_v9 = vld [vmem:[%s5210_s3 + $0x2b8] sm:$0xff] }
 0x227   :  { %v1182_v58 = vpop.f32.mrb[168].mxu1  ;;  %2820 = vmatprep.subr.msk.bf16.mxu0 %vm5880_vm8, %v2818_v34 }
 0x228   :  { %v1184_v29 = vpop.f32.mrb[169].mxu1  ;;  %2823 = vmatpush1.bf16.msk.msra.mxu0 %vm5885_vm3, %v2821_v1 }
 0x22b   :  { %v1188_v15 = vpop.f32.mrb[170].mxu1 }
 0x22c   :  { %v2827_v62 = vpack.c.bf16 %v1188_v15, %v1182_v58  ;;  %v1190_v20 = vpop.f32.mrb[171].mxu1 }
 0x22d   :  { %v2824_v7 = vpack.c.bf16 %v1190_v20, %v1184_v29 }
 0x22f   :  { %2826 = vmatprep.subr.msk.bf16.mxu0 %vm5890_vm2, %v2824_v7 }
 0x230   :  { %2829 = vmatpush1.bf16.msk.msra.mxu0 %vm5895_vm12, %v2827_v62 }
 0x233   :  { %1938 = vmatmul.mubr.f32.vlgmr.msra.gmra.mrb[84].mxu0 %v1580_v53 }
 0x234   :  { %1943 = vmatprep.mubr.f32.mxu0 %v1585_v31 }
 0x237   :  { %1944 = vmatmul.mubr.f32.gmra.mrb[86].mxu0 %v1584_v30 }
 0x238   :  { %1949 = vmatprep.mubr.f32.mxu0 %v1589_v3 }
 0x23b   :  { %1950 = vmatmul.mubr.f32.gmra.mrb[88].mxu0 %v1588_v17 }
 0x23c   :  { %1955 = vmatprep.mubr.f32.mxu0 %v1593_v25 }
 0x23f   :  { %1956 = vmatmul.mubr.f32.gmra.mrb[90].mxu0 %v1592_v26 }
 0x240   :  { %1961 = vmatprep.mubr.f32.mxu0 %v1597_v54 }
 0x243   :  { %1962 = vmatmul.mubr.f32.gmra.mrb[92].mxu0 %v1596_v44 }
 0x244   :  { %1967 = vmatprep.mubr.f32.mxu0 %v1601_v57 }
 0x247   :  { %1968 = vmatmul.mubr.f32.gmra.mrb[94].mxu0 %v1600_v2 }
 0x248   :  { %1973 = vmatprep.mubr.f32.mxu0 %v1605_v13 }
 0x24b   :  { %1974 = vmatmul.mubr.f32.gmra.mrb[96].mxu0 %v1604_v38 }
 0x24c   :  { %1979 = vmatprep.mubr.f32.mxu0 %v1609_v41 }
 0x24f   :  { %1980 = vmatmul.mubr.f32.gmra.mrb[98].mxu0 %v1608_v47 }
 0x250   :  { %1985 = vmatprep.mubr.f32.mxu0 %v1613_v45 }
 0x253   :  { %1986 = vmatmul.mubr.f32.gmra.mrb[100].mxu0 %v1612_v19 }
 0x254   :  { %1991 = vmatprep.mubr.f32.mxu0 %v1617_v39 }
 0x257   :  { %1992 = vmatmul.mubr.f32.gmra.mrb[102].mxu0 %v1616_v35 }
 0x258   :  { %1997 = vmatprep.mubr.f32.mxu0 %v1621_v24 }
 0x25b   :  { %1998 = vmatmul.mubr.f32.gmra.mrb[104].mxu0 %v1620_v36 }
 0x25c   :  { %2003 = vmatprep.mubr.f32.mxu0 %v1625_v33 }
 0x25f   :  { %2004 = vmatmul.mubr.f32.gmra.mrb[106].mxu0 %v1624_v10 }
 0x260   :  { %2009 = vmatprep.mubr.f32.mxu0 %v1629_v6 }
 0x263   :  { %2010 = vmatmul.mubr.f32.gmra.mrb[108].mxu0 %v1628_v16 }
 0x264   :  { %2015 = vmatprep.mubr.f32.mxu0 %v1633_v60 }
 0x267   :  { %2016 = vmatmul.mubr.f32.gmra.mrb[110].mxu0 %v1632_v8 }
 0x268   :  { %2021 = vmatprep.mubr.f32.mxu0 %v1637_v55 }
 0x26b   :  { %2022 = vmatmul.mubr.f32.gmra.mrb[112].mxu0 %v1636_v52 }
 0x26c   :  { %2027 = vmatprep.mubr.f32.mxu0 %v1641_v51 }
 0x26f   :  { %2028 = vmatmul.mubr.f32.gmra.mrb[114].mxu0 %v1640_v50 }
 0x270   :  { %2033 = vmatprep.mubr.f32.mxu0 %v1645_v48 }
 0x273   :  { %2034 = vmatmul.mubr.f32.gmra.mrb[116].mxu0 %v1644_v4 }
 0x274   :  { %2039 = vmatprep.mubr.f32.mxu0 %v1649_v63 }
 0x277   :  { %2040 = vmatmul.mubr.f32.gmra.mrb[118].mxu0 %v1648_v37 }
 0x278   :  { %2045 = vmatprep.mubr.f32.mxu0 %v1653_v28 }
 0x27b   :  { %2046 = vmatmul.mubr.f32.gmra.mrb[120].mxu0 %v1652_v22 }
 0x27c   :  { %2051 = vmatprep.mubr.f32.mxu0 %v1657_v32 }
 0x27f   :  { %2052 = vmatmul.mubr.f32.gmra.mrb[122].mxu0 %v1656_v42 }
 0x280   :  { %2057 = vmatprep.mubr.f32.mxu0 %v1661_v40 }
 0x283   :  { %2058 = vmatmul.mubr.f32.gmra.mrb[124].mxu0 %v1660_v27 }
 0x284   :  { %2063 = vmatprep.mubr.f32.mxu0 %v1665_v9 }
 0x287   :  { %2064 = vmatmul.mubr.f32.gmra.mrb[126].mxu0 %v1664_v43 }
 0x306   :  { %v1939_v0 = vpop.f32.mrb[84].mxu0 }
 0x307   :  { %v1941_v23 = vpop.f32.mrb[85].mxu0  ;;  %v2218_v12 = vmul.f32 %v1939_v0, %v1939_v0 }
 0x308   :  { %v2219_v61 = vmul.f32 %v1941_v23, %v1941_v23 }
 0x30a   :  { %v1945_v1 = vpop.f32.mrb[86].mxu0 }
 0x30b   :  { %v2220_v34 = vmul.f32 %v1945_v1, %v1945_v1  ;;  %v1947_v58 = vpop.f32.mrb[87].mxu0 }
 0x30c   :  { %v2221_v59 = vmul.f32 %v1947_v58, %v1947_v58 }
 0x30d   :  { %v2840_v29 = vpack.c.bf16 %v2220_v34, %v2218_v12 }
 0x30e   :  { %v2838_v21 = vpack.c.bf16 %v2221_v59, %v2219_v61  ;;  %v1951_v14 = vpop.f32.mrb[88].mxu0 }
 0x30f   :  { %v1953_v15 = vpop.f32.mrb[89].mxu0  ;;  %v2222_v20 = vmul.f32 %v1951_v14, %v1951_v14 }
 0x310   :  { %2839 = vmatprep.subr.bf16.mxu0 %v2838_v21  ;;  %v2223_v5 = vmul.f32 %v1953_v15, %v1953_v15 }
 0x311   :  { %2841 = vmatpush1.bf16.msra.mxu0 %v2840_v29 }
 0x312   :  { %v1957_v62 = vpop.f32.mrb[90].mxu0 }
 0x313   :  { %v2224_v7 = vmul.f32 %v1957_v62, %v1957_v62  ;;  %v1959_v18 = vpop.f32.mrb[91].mxu0 }
 0x314   :  { %v2225_v56 = vmul.f32 %v1959_v18, %v1959_v18 }
 0x315   :  { %v2844_v49 = vpack.c.bf16 %v2224_v7, %v2222_v20 }
 0x316   :  { %v2842_v53 = vpack.c.bf16 %v2225_v56, %v2223_v5  ;;  %v1963_v31 = vpop.f32.mrb[92].mxu0 }
 0x317   :  { %v1965_v30 = vpop.f32.mrb[93].mxu0  ;;  %v2226_v17 = vmul.f32 %v1963_v31, %v1963_v31 }
 0x318   :  { %2843 = vmatprep.subr.bf16.mxu0 %v2842_v53  ;;  %v2227_v54 = vmul.f32 %v1965_v30, %v1965_v30 }
 0x319   :  { %2845 = vmatpush1.bf16.msra.mxu0 %v2844_v49 }
 0x31a   :  { %v1969_v3 = vpop.f32.mrb[94].mxu0 }
 0x31b   :  { %v2228_v25 = vmul.f32 %v1969_v3, %v1969_v3  ;;  %v1971_v26 = vpop.f32.mrb[95].mxu0 }
 0x31c   :  { %v2229_v44 = vmul.f32 %v1971_v26, %v1971_v26 }
 0x31d   :  { %v2848_v57 = vpack.c.bf16 %v2228_v25, %v2226_v17  ;;  %v2083_v17 = vpop.permute.xlu0 %2082 }
 0x31e   :  { %v2846_v2 = vpack.c.bf16 %v2229_v44, %v2227_v54  ;;  %v1975_v13 = vpop.f32.mrb[96].mxu0 }
 0x31f   :  { %v1977_v38 = vpop.f32.mrb[97].mxu0  ;;  %v2230_v47 = vmul.f32 %v1975_v13, %v1975_v13 }
 0x320   :  { %2847 = vmatprep.subr.bf16.mxu0 %v2846_v2  ;;  %v2231_v39 = vmul.f32 %v1977_v38, %v1977_v38 }
 0x321   :  { %2849 = vmatpush1.bf16.msra.mxu0 %v2848_v57  ;;  %v2088_v38 = vpop.permute.xlu0 %2087 }
 0x322   :  { %v1981_v41 = vpop.f32.mrb[98].mxu0 }
 0x323   :  { %v2232_v45 = vmul.f32 %v1981_v41, %v1981_v41  ;;  %v1983_v19 = vpop.f32.mrb[99].mxu0 }
 0x324   :  { %v2233_v35 = vmul.f32 %v1983_v19, %v1983_v19 }
 0x325   :  { %v2852_v24 = vpack.c.bf16 %v2232_v45, %v2230_v47 }
 0x326   :  { %v2850_v46 = vpack.c.bf16 %v2233_v35, %v2231_v39  ;;  %v1987_v36 = vpop.f32.mrb[100].mxu0  ;;  %v2093_v35 = vpop.permute.xlu1 %2092 }
 0x327   :  { %v1989_v33 = vpop.f32.mrb[101].mxu0  ;;  %v2234_v6 = vmul.f32 %v1987_v36, %v1987_v36 }
 0x328   :  { %2851 = vmatprep.subr.bf16.mxu0 %v2850_v46  ;;  %v2235_v8 = vmul.f32 %v1989_v33, %v1989_v33 }
 0x329   :  { %2853 = vmatpush1.bf16.msra.mxu0 %v2852_v24 }
 0x32a   :  { %v1993_v10 = vpop.f32.mrb[102].mxu0 }
 0x32b   :  { %v2236_v16 = vmul.f32 %v1993_v10, %v1993_v10  ;;  %v1995_v60 = vpop.f32.mrb[103].mxu0 }
 0x32c   :  { %v2237_v55 = vmul.f32 %v1995_v60, %v1995_v60 }
 0x32d   :  { %v2856_v52 = vpack.c.bf16 %v2236_v16, %v2234_v6 }
 0x32e   :  { %v2854_v51 = vpack.c.bf16 %v2237_v55, %v2235_v8  ;;  %v1999_v50 = vpop.f32.mrb[104].mxu0 }
 0x32f   :  { %v2001_v48 = vpop.f32.mrb[105].mxu0  ;;  %v2238_v63 = vmul.f32 %v1999_v50, %v1999_v50 }
 0x330   :  { %2855 = vmatprep.subr.bf16.mxu0 %v2854_v51  ;;  %v2239_v22 = vmul.f32 %v2001_v48, %v2001_v48 }
 0x331   :  { %2857 = vmatpush1.bf16.msra.mxu0 %v2856_v52  ;;  %v2098_v52 = vpop.permute.xlu1 %2097 }
 0x332   :  { %v2005_v4 = vpop.f32.mrb[106].mxu0 }
 0x333   :  { %v2240_v37 = vmul.f32 %v2005_v4, %v2005_v4  ;;  %v2007_v28 = vpop.f32.mrb[107].mxu0 }
 0x334   :  { %v2241_v32 = vmul.f32 %v2007_v28, %v2007_v28 }
 0x335   :  { %v2860_v42 = vpack.c.bf16 %v2240_v37, %v2238_v63 }
 0x336   :  { %v2858_v40 = vpack.c.bf16 %v2241_v32, %v2239_v22  ;;  %v2011_v27 = vpop.f32.mrb[108].mxu0 }
 0x337   :  { %v2013_v9 = vpop.f32.mrb[109].mxu0  ;;  %v2242_v0 = vmul.f32 %v2011_v27, %v2011_v27  ;;  %v5896_v27 = vmov 0.0  }
 0x338   :  { %2859 = vmatprep.subr.bf16.mxu0 %v2858_v40  ;;  %v2243_v12 = vmul.f32 %v2013_v9, %v2013_v9  ;;  %v2116_v40 = vld [vmem:[%s5212_s5] sm:$0xff]  ;;  %v2117_v9 = vld [vmem:[%s5212_s5 + $0x8] sm:$0xff] }
 0x339   :  { %2861 = vmatpush1.bf16.msra.mxu0 %v2860_v42 }
 0x33a   :  { %v2017_v43 = vpop.f32.mrb[110].mxu0 }
 0x33b   :  { %v2244_v23 = vmul.f32 %v2017_v43, %v2017_v43  ;;  %v2019_v1 = vpop.f32.mrb[111].mxu0  ;;  %v1669_v43 = vld [vmem:[%s5210_s3 + $0x2d8] sm:$0x1] }
 0x33c   :  { %v2245_v34 = vmul.f32 %v2019_v1, %v2019_v1  ;;  %2069 = vmatprep.mubr.f32.mxu0 %v1669_v43  ;;  %v2254_v1 = vld [vmem:[%s5214_s7] sm:$0x3]  ;;  %s2975_s7 = smov [#allocation3]  }
 0x33d   :  { %v2864_v58 = vpack.c.bf16 %v2244_v23, %v2242_v0  ;;  %v1668_v0 = vld [vmem:[%s5210_s3 + $0x2d0] sm:$0x1]  ;;  %v2262_v23 = vsub.s32 1, %v3599_v11  ;;  %s2371_s15 = sshll.u32 %s2975_s7, 4  ;;  %s2372_s15 = int_to_ptr.vmem [resolvable:$true] %s2371_s15 }
 0x33e   :  { %v2862_v61 = vpack.c.bf16 %v2245_v34, %v2243_v12  ;;  %v2023_v59 = vpop.f32.mrb[112].mxu0  ;;  %2070 = vmatmul.mubr.f32.gmra.mrb[128].mxu0 %v1668_v0  ;;  %s2948_s0 = scalar_lea.vmem %s2372_s15, 32  ;;  %p2953_p1 = scmp.lt.s32.totalorder %s2372_s15, %s2372_s15 }
 0x33f   :  { %v2025_v29 = vpop.f32.mrb[113].mxu0  ;;  %v2246_v14 = vmul.f32 %v2023_v59, %v2023_v59  ;;  %v2263_v12 = vrot.slane %v2254_v1, %v2262_v23  ;;  %p2949_p0 = scmp.ne.s32.totalorder %s2372_s15, %s2948_s0  ;;  %p2954_p2 = scmp.lt.s32.totalorder %s2948_s0, %s2948_s0 }
 0x340   :  { %2863 = vmatprep.subr.bf16.mxu0 %v2862_v61  ;;  %v2247_v20 = vmul.f32 %v2025_v29, %v2025_v29  ;;  %v2123_v61 = vpop.permute.xlu0 %2122  ;;  %v2128_v29 = vpop.permute.xlu1 %2127 }
 0x341   :  { %2865 = vmatpush1.bf16.msra.mxu0 %v2864_v58  ;;  %2637 = vmatprep.mubr.msk.f32.mxu0 %vm2130_vm11, %v2263_v12  ;;  %p2955_p3 = por %p2954_p2, %p2953_p1 }
 0x342   :  { %v2029_v21 = vpop.f32.mrb[114].mxu0 }
 0x343   :  { %v2248_v15 = vmul.f32 %v2029_v21, %v2029_v21  ;;  %v2031_v62 = vpop.f32.mrb[115].mxu0  ;;  %p2956_p4 = pnand %p2955_p3, %p2949_p0 }
 0x344   :  { %v2249_v7 = vmul.f32 %v2031_v62, %v2031_v62 }
 0x345   :  { %v2868_v18 = vpack.c.bf16 %v2248_v15, %v2246_v14 }
 0x346   :  { %v2866_v5 = vpack.c.bf16 %v2249_v7, %v2247_v20  ;;  %v2035_v56 = vpop.f32.mrb[116].mxu0 }
 0x347   :  { %v2037_v49 = vpop.f32.mrb[117].mxu0  ;;  %v2250_v31 = vmul.f32 %v2035_v56, %v2035_v56 }
 0x348   :  { %2867 = vmatprep.subr.bf16.mxu0 %v2866_v5  ;;  %v2251_v25 = vmul.f32 %v2037_v49, %v2037_v49  ;;  %v2258_v49 = vsub.s32 0, %v3599_v11 }
 0x349   :  { %2869 = vmatpush1.bf16.msra.mxu0 %v2868_v18 }
 0x34a   :  { %v2041_v53 = vpop.f32.mrb[118].mxu0 }
 0x34b   :  { %v2252_v30 = vmul.f32 %v2041_v53, %v2041_v53  ;;  %v2043_v3 = vpop.f32.mrb[119].mxu0 }
 0x34c   :  { %v2253_v26 = vmul.f32 %v2043_v3, %v2043_v3  ;;  %v2974_v3 = vmov 1966171168  }
 0x34d   :  { %v2872_v54 = vpack.c.bf16 %v2252_v30, %v2250_v31  ;;  %v2259_v30 = vrot.slane %v2254_v1, %v2258_v49 }
 0x34e   :  { %v2870_v44 = vpack.c.bf16 %v2253_v26, %v2251_v25  ;;  %v2047_v57 = vpop.f32.mrb[120].mxu0  ;;  %v2339_v25 = vstv %s5215_s8 }
 0x34f   :  { %v2049_v2 = vpop.f32.mrb[121].mxu0  ;;  %v2100_v13 = vadd.f32 %v2083_v17, %v2047_v57 }
 0x350   :  { %2871 = vmatprep.subr.bf16.mxu0 %v2870_v44  ;;  %v2101_v41 = vadd.f32 %v2083_v17, %v2049_v2  ;;  %v2346_v17 = vunpack.c.l.s4 %v2974_v3 }
 0x351   :  { %2873 = vmatpush1.bf16.msra.mxu0 %v2872_v54  ;;  %v2108_v24 = vmax.f32 %v2100_v13, 0.0 }
 0x352   :  { %v2053_v47 = vpop.f32.mrb[122].mxu0  ;;  %v2109_v36 = vmax.f32 %v2101_v41, 0.0  ;;  %v2347_v26 = vunpack.c.0.s8 %v2346_v17 }
 0x353   :  { %v2102_v45 = vadd.f32 %v2088_v38, %v2053_v47  ;;  %v2055_v19 = vpop.f32.mrb[123].mxu0  ;;  %v5897_v47 = vlaneseq }
 0x354   :  { %v2103_v39 = vadd.f32 %v2088_v38, %v2055_v19  ;;  %v2350_v13 = vsub.s32 %v2347_v26, %v3599_v11 }
 0x355   :  { %v2110_v46 = vmax.f32 %v2102_v45, 0.0  ;;  %vm2362_vm13 = vcmp.lt.s32.totalorder %v5897_v47, 256 }
 0x356   :  { %v2111_v33 = vmax.f32 %v2103_v39, 0.0  ;;  %v2059_v10 = vpop.f32.mrb[124].mxu0 }
 0x357   :  { %v2832_v6 = vpack.c.bf16 %v2110_v46, %v2108_v24  ;;  %v2061_v16 = vpop.f32.mrb[125].mxu0  ;;  %v2104_v8 = vadd.f32 %v2093_v35, %v2059_v10 }
 0x358   :  { %v2830_v60 = vpack.c.bf16 %v2111_v33, %v2109_v36  ;;  %v2105_v55 = vadd.f32 %v2093_v35, %v2061_v16 }
 0x359   :  { %v2112_v63 = vmax.f32 %v2104_v8, 0.0 }
 0x35a   :  { %v2065_v51 = vpop.f32.mrb[126].mxu0  ;;  %2831 = vmatprep.subr.bf16.mxu1 %v2830_v60  ;;  %v2113_v28 = vmax.f32 %v2105_v55, 0.0 }
 0x35b   :  { %v2106_v50 = vadd.f32 %v2098_v52, %v2065_v51  ;;  %v2067_v48 = vpop.f32.mrb[127].mxu0  ;;  %2833 = vmatpush1.bf16.msra.mxu1 %v2832_v6 }
 0x35c   :  { %v2107_v4 = vadd.f32 %v2098_v52, %v2067_v48 }
 0x35d   :  { %v2114_v37 = vmax.f32 %v2106_v50, 0.0 }
 0x35e   :  { %v2115_v22 = vmax.f32 %v2107_v4, 0.0 }
 0x35f   :  { %v2836_v32 = vpack.c.bf16 %v2114_v37, %v2112_v63 }
 0x360   :  { %v2834_v42 = vpack.c.bf16 %v2115_v22, %v2113_v28 }
 0x362   :  { %2835 = vmatprep.subr.bf16.mxu1 %v2834_v42 }
 0x363   :  { %2837 = vmatpush1.bf16.msra.mxu1 %v2836_v32 }
 0x366   :  { %2635 = vmatmul.mubr.msk.f32.vlgmr.msra.gmra.mrb[172].mxu1 %vm2130_vm11, %v2116_v40 }
 0x367   :  { %2207 = vmatprep.mubr.f32.mxu1 %v5896_v27 }
 0x36a   :  { %2636 = vmatmul.mubr.msk.f32.gmra.mrb[174].mxu1 %vm2130_vm11, %v2117_v9 }
 0x439   :  { %v2203_v34 = vpop.f32.mrb[172].mxu1 }
 0x43a   :  { %v2205_v58 = vpop.f32.mrb[173].mxu1  ;;  %v2204_v59 = vadd.f32 %v2203_v34, %v2123_v61 }
 0x43b   :  { %v2206_v21 = vadd.f32 %v2205_v58, %v2123_v61 }
 0x43c   :  { %v2214_v7 = vmax.f32 %v2204_v59, 0.0 }
 0x43d   :  { %v2209_v14 = vpop.f32.mrb[174].mxu1  ;;  %v2215_v5 = vmax.f32 %v2206_v21, 0.0 }
 0x43e   :  { %v2210_v15 = vadd.f32 %v2209_v14, %v2128_v29  ;;  %v2211_v62 = vpop.f32.mrb[175].mxu1 }
 0x43f   :  { %v2212_v20 = vadd.f32 %v2211_v62, %v2128_v29 }
 0x440   :  { %v2216_v18 = vmax.f32 %v2210_v15, 0.0 }
 0x441   :  { %v2217_v56 = vmax.f32 %v2212_v20, 0.0 }
 0x442   :  { %v2876_v53 = vpack.c.bf16 %v2216_v18, %v2214_v7 }
 0x443   :  { %v2874_v31 = vpack.c.bf16 %v2217_v56, %v2215_v5 }
 0x445   :  { %2875 = vmatprep.subr.bf16.mxu0 %v2874_v31 }
 0x446   :  { %2877 = vmatpush1.bf16.msra.mxu0 %v2876_v53 }
 0x449   :  { %2332 = vmatmul.mubr.f32.vlgmr.msra.gmra.mrb[128].mxu0 %v2259_v30 }
 0x51c   :  { %v2333_v54 = vpop.f32.mrb[128].mxu0 }
 0x51d   :  { %v2340_v44 = vadd.f32 %v2339_v25, %v2333_v54  ;;  %v2335_v57 = vpop.f32.mrb[129].mxu0 }
 0x51e   :  { %v2341_v2 = vadd.f32 %v2339_v25, %v2335_v57 }
 0x520   :  { %v2344_v38 = vcombine.low %v2340_v44, %v2341_v2 }
 0x522   :  { %v2351_v41 = vrot.slane %v2344_v38, %v2350_v13 }
 0x524   :  { %v2358_v45 = vrot.slane %v2351_v41, %v2350_v13 }
 0x526   :  { %2364 = vst.msk [vmem:[#allocation3] sm:$0x3] %vm2362_vm13, %v2358_v45 }
 0x527   :  { %2959 = shalt.err (!%p2956_p4)
}
 0x528   :  { %s2960_s17 = scalar_lea.hbm %s5216_s9, 32 }
 0x529   :  { %p2961_p5 = scmp.ne.s32.totalorder %s5216_s9, %s2960_s17  ;;  %p2964_p6 = scmp.lt.u32.totalorder %s2960_s17, %s5216_s9 }
 0x52b   :  { %p2966_p7 = pnand %p2964_p6, %p2961_p5 }
 0x52d   :  { %2969 = shalt.err (!%p2966_p7)
}
 0x52e   :  { %2374 = dma.vmem_to_hbm [thread:$0]  %s2372_s15, 32, %s5216_s9, [#allocation4]  }
 0x52f   :  { %2970 = dma.done.wait [#allocation4], 32  }
 0x530   :  { %2971 = vsyncadd [#allocation4], 4294967264 }
 0x531   :  { %2378 = vsyncpa [#allocation4], 1 }

</bundles_post_ra>
